<compile_context>
chip_gen: v7x
topology: tpu7x:2x2x1
jax: 0.10.0
libtpu: 0.0.40
codegen_flags: <defaults>
</compile_context>

<pallas_src>
import functools

import jax
import jax.numpy as jnp
from jax.experimental import pallas as pl
from jax.experimental.pallas import tpu as pltpu


def _round_up(x, m):
    return ((x + m - 1) // m) * m


def _tcn_block_kernel(xhalo_ref, xcur_ref, w1_ref, b1_ref, w2_ref, b2_ref,
                      *rest, dilation, ksize, tile_l, halo_l, pad_ext,
                      has_downsample):
    """One fused TemporalBlock on a (1, Cout, tile_l) output tile."""
    if has_downsample:
        wd_ref, bd_ref, o_ref, xfull_ref = rest
    else:
        o_ref, xfull_ref = rest

    l = pl.program_id(1)
    pad = (ksize - 1) * dilation
    h_len = tile_l + pad_ext                       # lane-dense (multiple of 128)

    # --- stage causal halo + current tile into one VMEM scratch buffer -------
    xc = xcur_ref[0]                               # (Cin, tile_l)
    xh = xhalo_ref[0]                              # (Cin, halo_l)
    # First L tile: the halo is conv1's causal zero padding.
    xh = jnp.where(l == 0, jnp.zeros_like(xh), xh)
    xfull_ref[:, 0:halo_l] = xh
    xfull_ref[:, halo_l:halo_l + tile_l] = xc
    # xfull_ref[:, j] holds x at global position  l*tile_l - halo_l + j.

    # --- conv1 (dilated, causal) + bias + ReLU -------------------------------
    # h1[:, i] = conv1 output at global position  l*tile_l - pad_ext + i.
    # Columns i < pad_ext - pad are lane-density filler, never read by conv2.
    w1 = w1_ref[...]                               # (K, Cmid, Cin)
    base1 = halo_l - pad_ext - pad                 # >= 0 by construction
    acc1 = jnp.zeros((w1.shape[1], h_len), jnp.float32)
    for k in range(ksize):                         # K is tiny and static
        off = base1 + k * dilation
        acc1 = acc1 + jnp.dot(w1[k], xfull_ref[:, off:off + h_len],
                              preferred_element_type=jnp.float32)
    h1 = jnp.maximum(acc1 + b1_ref[...], 0.0)
    # conv2's causal zero padding: its input is zero at global positions < 0.
    gpos = l * tile_l - pad_ext + jax.lax.broadcasted_iota(jnp.int32, (1, h_len), 1)
    h1 = jnp.where(gpos >= 0, h1, 0.0).astype(w2_ref.dtype)

    # --- conv2 (dilated, causal) + bias + ReLU -------------------------------
    w2 = w2_ref[...]                               # (K, Cout, Cmid)
    base2 = pad_ext - pad
    acc2 = jnp.zeros((w2.shape[1], tile_l), jnp.float32)
    for k in range(ksize):
        off = base2 + k * dilation
        acc2 = acc2 + jnp.dot(w2[k], h1[:, off:off + tile_l],
                              preferred_element_type=jnp.float32)
    out = jnp.maximum(acc2 + b2_ref[...], 0.0)

    # --- residual branch (optional 1x1 downsample) + final block ReLU --------
    if has_downsample:
        res = jnp.dot(wd_ref[...], xc, preferred_element_type=jnp.float32)
        res = res + bd_ref[...]
    else:
        res = xc.astype(jnp.float32)
    o_ref[0] = jnp.maximum(out + res, 0.0).astype(o_ref.dtype)


def temporal_block(x, w1, b1, w2, b2, wd, bd, dilation, *, tile_l=512,
                   compute_dtype=None):
    """Fused TemporalBlock. x: (B, Cin, Lp), Lp % tile_l == 0 -> (B, Cout, Lp)."""
    B, Cin, Lp = x.shape
    Cout, _, K = w1.shape
    pad = (K - 1) * dilation
    if compute_dtype is None:
        compute_dtype = x.dtype
    assert tile_l % 128 == 0, "tile_l must be lane-dense (multiple of 128)"
    assert Lp % tile_l == 0, "sequence must be padded to a multiple of tile_l"

    # Lane-dense conv1 intermediate: left-extend h1 by pad_ext (128-multiple).
    pad_ext = _round_up(max(pad, 1), 128)
    halo_need = pad_ext + pad                       # input lanes left of the tile
    assert halo_need <= tile_l, (
        f"tile_l={tile_l} too small for dilation={dilation} (needs {halo_need})")
    halo_l = _round_up(halo_need, 128)
    while tile_l % halo_l:                          # halo blocks must tile tile_l
        halo_l += 128
    r = tile_l // halo_l

    xc = x.astype(compute_dtype)
    # Lane-dense per-tap weights: (Cout, Cin, K) -> (K, Cout, Cin).
    w1t = jnp.transpose(w1, (2, 0, 1)).astype(compute_dtype)
    w2t = jnp.transpose(w2, (2, 0, 1)).astype(compute_dtype)
    b1f = b1.astype(jnp.float32)
    b2f = b2.astype(jnp.float32)

    has_downsample = wd is not None
    grid = (B, Lp // tile_l)

    def _halo_map(b, l):
        # Last halo_l lanes of the previous tile; clamped (and zeroed in-kernel)
        # on the first tile.
        return (b, 0, jnp.maximum(l * r - 1, 0))

    in_specs = [
        pl.BlockSpec((1, Cin, halo_l), _halo_map),                    # causal halo
        pl.BlockSpec((1, Cin, tile_l), lambda b, l: (b, 0, l)),       # current tile
        pl.BlockSpec((K, Cout, Cin), lambda b, l: (0, 0, 0)),
        pl.BlockSpec((Cout, 1), lambda b, l: (0, 0)),
        pl.BlockSpec((K, Cout, Cout), lambda b, l: (0, 0, 0)),
        pl.BlockSpec((Cout, 1), lambda b, l: (0, 0)),
    ]
    args = [xc, xc, w1t, b1f, w2t, b2f]
    if has_downsample:
        in_specs += [
            pl.BlockSpec((Cout, Cin), lambda b, l: (0, 0)),
            pl.BlockSpec((Cout, 1), lambda b, l: (0, 0)),
        ]
        args += [wd.astype(compute_dtype), bd.astype(jnp.float32)]

    # Advisory cost estimate so XLA schedules the chained per-block calls well.
    itemsize = jnp.dtype(compute_dtype).itemsize
    flops = 2 * K * (Cin * Cout + Cout * Cout) * B * Lp
    weight_bytes = (w1.size + w2.size) * itemsize + (b1.size + b2.size) * 4
    if has_downsample:
        flops += 2 * Cin * Cout * B * Lp
        weight_bytes += wd.size * itemsize + bd.size * 4
    bytes_accessed = (B * Cin * Lp + B * Cout * Lp) * itemsize + weight_bytes
    cost = pl.CostEstimate(flops=int(flops), transcendentals=0,
                           bytes_accessed=int(bytes_accessed))

    kernel = functools.partial(_tcn_block_kernel, dilation=dilation, ksize=K,
                               tile_l=tile_l, halo_l=halo_l, pad_ext=pad_ext,
                               has_downsample=has_downsample)
    return pl.pallas_call(
        kernel,
        out_shape=jax.ShapeDtypeStruct((B, Cout, Lp), compute_dtype),
        grid=grid,
        in_specs=in_specs,
        out_specs=pl.BlockSpec((1, Cout, tile_l), lambda b, l: (b, 0, l)),
        scratch_shapes=[pltpu.VMEM((Cin, halo_l + tile_l), compute_dtype)],
        cost_estimate=cost,
        compiler_params=pltpu.CompilerParams(
            dimension_semantics=("parallel", "parallel"),
            # Fits all generations (v7x physical VMEM is only 64 MiB per core).
            vmem_limit_bytes=48 * 1024 * 1024),
    )(*args)


def temporal_conv_net(x, params, *, tile_l=512, compute_dtype=None):
    """Forward pass of TemporalConvNet. x: (B, num_inputs, L)."""
    B, _, L = x.shape
    K = params[0]["w1"].shape[-1]

    # Make sure tile_l covers the largest causal halo of the stack.
    max_need = 0
    for i in range(len(params)):
        pad = (K - 1) * (2 ** i)
        max_need = max(max_need, _round_up(max(pad, 1), 128) + pad)
    tile_l = max(tile_l, _round_up(max_need, 128))
    assert tile_l % 128 == 0

    # Single right pad at the network boundary (causal convs: the padded tail
    # never influences positions < L); cropped again at the end.
    Lp = _round_up(L, tile_l)
    h = x if Lp == L else jnp.pad(x, ((0, 0), (0, 0), (0, Lp - L)))
    for i, p in enumerate(params):
        h = temporal_block(h, p["w1"], p["b1"], p["w2"], p["b2"],
                           p["wd"], p["bd"], 2 ** i,
                           tile_l=tile_l, compute_dtype=compute_dtype)
    h = h if Lp == L else h[:, :, :L]
    return h.astype(x.dtype)


def init_tcn_params(key, num_inputs, num_channels, kernel_size=2):
    """Deterministic synthetic parameters (matching the PyTorch __init__ shapes).

    These are the *effective* conv weights (weight_norm already folded)."""
    params = []
    for i, out_ch in enumerate(num_channels):
        in_ch = num_inputs if i == 0 else num_channels[i - 1]
        key, k1, k2, k3, k4, k5, k6 = jax.random.split(key, 7)
        p = {
            "w1": 0.01 * jax.random.normal(k1, (out_ch, in_ch, kernel_size), jnp.float32),
            "b1": 0.05 * jax.random.normal(k2, (out_ch, 1), jnp.float32),
            "w2": 0.01 * jax.random.normal(k3, (out_ch, out_ch, kernel_size), jnp.float32),
            "b2": 0.05 * jax.random.normal(k4, (out_ch, 1), jnp.float32),
        }
        if in_ch != out_ch:
            p["wd"] = 0.01 * jax.random.normal(k5, (out_ch, in_ch), jnp.float32)
            p["bd"] = 0.05 * jax.random.normal(k6, (out_ch, 1), jnp.float32)
        else:
            p["wd"] = None
            p["bd"] = None
        params.append(p)
    return params


def _tcn_reference(x, params):
    """Pure-JAX reference of TemporalConvNet (inference: dropout = identity)."""
    K = params[0]["w1"].shape[-1]
    h = x
    for i, p in enumerate(params):
        d = 2 ** i
        pad = (K - 1) * d

        def causal_conv(inp, w, b, pad=pad, d=d):
            out = jax.lax.conv_general_dilated(
                inp, w, window_strides=(1,), padding=[(pad, 0)],
                rhs_dilation=(d,), dimension_numbers=("NCH", "OIH", "NCH"))
            return out + b[None]

        h1 = jax.nn.relu(causal_conv(h, p["w1"], p["b1"]))
        h2 = jax.nn.relu(causal_conv(h1, p["w2"], p["b2"]))
        if p["wd"] is None:
            res = h
        else:
            res = jnp.einsum("oc,bcl->bol", p["wd"], h) + p["bd"][None]
        h = jax.nn.relu(h2 + res)
    return h


if __name__ == "__main__":
    key = jax.random.PRNGKey(0)
    key, kx, kp = jax.random.split(key, 3)

    batch, num_inputs, seq_len = 2, 4, 16
    num_channels = (8, 8, 4)   # middle block exercises the identity-residual path
    kernel_size = 2

    params = init_tcn_params(kp, num_inputs, num_channels, kernel_size)
    fwd = jax.jit(temporal_conv_net)

    # Small demo shape (single L tile) plus a longer sequence that exercises the
    # multi-tile causal-halo path (tile_l=512 -> 2 L tiles).
    for L in (seq_len, 700):
        kx, ksub = jax.random.split(kx)
        x = jax.random.normal(ksub, (batch, num_inputs, L), jnp.float32)
        out = jax.block_until_ready(fwd(x, params))
        assert out.shape == (batch, num_channels[-1], L)
        assert bool(jnp.all(jnp.isfinite(out)))
        ref = _tcn_reference(x, params)
        assert bool(jnp.allclose(out, ref, atol=1e-3, rtol=1e-3)), (
            "max abs err = " + str(float(jnp.max(jnp.abs(out - ref)))))
    print("KERNEL_OK")
</pallas_src>

<mosaic_0001>
module attributes {stable_mosaic.version = 11 : i64} {
  func.func @_tcn_block_kernel(%arg0: i32, %arg1: i32, %arg2: memref<1x4x256xf32, #tpu.memory_space<vmem>>, %arg3: memref<1x4x512xf32, #tpu.memory_space<vmem>>, %arg4: memref<2x8x4xf32, #tpu.memory_space<vmem>>, %arg5: memref<8x1xf32, #tpu.memory_space<vmem>>, %arg6: memref<2x8x8xf32, #tpu.memory_space<vmem>>, %arg7: memref<8x1xf32, #tpu.memory_space<vmem>>, %arg8: memref<8x4xf32, #tpu.memory_space<vmem>>, %arg9: memref<8x1xf32, #tpu.memory_space<vmem>>, %arg10: memref<1x8x512xf32, #tpu.memory_space<vmem>>, %arg11: memref<4x768xf32, #tpu.memory_space<vmem>>) attributes {dimension_semantics = [#tpu.dimension_semantics<parallel>, #tpu.dimension_semantics<parallel>], iteration_bounds = array<i64: 2, 1>, scalar_prefetch = 0 : i64, scratch_operands = 1 : i64, tpu.core_type = #tpu.core_type<tc>, window_params = [{transform_indices = @transform_0, window_bounds = array<i64: 1, 4, 256>}, {transform_indices = @transform_1, window_bounds = array<i64: 1, 4, 512>}, {pipeline_mode = #tpu.pipeline_mode<synchronous>, transform_indices = @transform_2, window_bounds = array<i64: 2, 8, 4>}, {pipeline_mode = #tpu.pipeline_mode<synchronous>, transform_indices = @transform_3, window_bounds = array<i64: 8, 1>}, {pipeline_mode = #tpu.pipeline_mode<synchronous>, transform_indices = @transform_4, window_bounds = array<i64: 2, 8, 8>}, {pipeline_mode = #tpu.pipeline_mode<synchronous>, transform_indices = @transform_5, window_bounds = array<i64: 8, 1>}, {pipeline_mode = #tpu.pipeline_mode<synchronous>, transform_indices = @transform_6, window_bounds = array<i64: 8, 4>}, {pipeline_mode = #tpu.pipeline_mode<synchronous>, transform_indices = @transform_7, window_bounds = array<i64: 8, 1>}, {transform_indices = @transform_8, window_bounds = array<i64: 1, 8, 512>}]} {
    %c0 = arith.constant 0 : index
    %c0_0 = arith.constant 0 : index
    %c0_1 = arith.constant 0 : index
    %0 = vector.load %arg3[%c0, %c0_0, %c0_1] : memref<1x4x512xf32, #tpu.memory_space<vmem>>, vector<1x4x512xf32>
    %1 = vector.shape_cast %0 : vector<1x4x512xf32> to vector<4x512xf32>
    %c0_2 = arith.constant 0 : index
    %c0_3 = arith.constant 0 : index
    %c0_4 = arith.constant 0 : index
    %2 = vector.load %arg2[%c0_2, %c0_3, %c0_4] : memref<1x4x256xf32, #tpu.memory_space<vmem>>, vector<1x4x256xf32>
    %3 = vector.shape_cast %2 : vector<1x4x256xf32> to vector<4x256xf32>
    %c0_i32 = arith.constant 0 : i32
    %4 = arith.cmpi eq, %arg1, %c0_i32 : i32
    %cst = arith.constant 0.000000e+00 : f32
    %5 = vector.broadcast %cst : f32 to vector<4x256xf32>
    %6 = arith.select %4, %5, %3 : vector<4x256xf32>
    %c0_5 = arith.constant 0 : index
    %c0_6 = arith.constant 0 : index
    %7 = vector.load %arg11[%c0_5, %c0_6] : memref<4x768xf32, #tpu.memory_space<vmem>>, vector<4x256xf32>
    tpu.vector_store %arg11[%c0_5, %c0_6], %6 {strides = array<i32>} : memref<4x768xf32, #tpu.memory_space<vmem>>, vector<4x256xf32>,
    %c0_7 = arith.constant 0 : index
    %c256 = arith.constant 256 : index
    %8 = vector.load %arg11[%c0_7, %c256] : memref<4x768xf32, #tpu.memory_space<vmem>>, vector<4x512xf32>
    tpu.vector_store %arg11[%c0_7, %c256], %1 {strides = array<i32>} : memref<4x768xf32, #tpu.memory_space<vmem>>, vector<4x512xf32>,
    %c0_8 = arith.constant 0 : index
    %c0_9 = arith.constant 0 : index
    %c0_10 = arith.constant 0 : index
    %9 = vector.load %arg4[%c0_8, %c0_9, %c0_10] : memref<2x8x4xf32, #tpu.memory_space<vmem>>, vector<2x8x4xf32>
    %cst_11 = arith.constant 0.000000e+00 : f32
    %10 = vector.broadcast %cst_11 : f32 to vector<8x640xf32>
    %11 = vector.extract_strided_slice %9 {offsets = [0, 0, 0], sizes = [1, 8, 4], strides = [1, 1, 1]} : vector<2x8x4xf32> to vector<1x8x4xf32>
    %12 = vector.shape_cast %11 : vector<1x8x4xf32> to vector<8x4xf32>
    %c0_12 = arith.constant 0 : index
    %c127 = arith.constant 127 : index
    %13 = vector.load %arg11[%c0_12, %c127] : memref<4x768xf32, #tpu.memory_space<vmem>>, vector<4x640xf32>
    %cst_13 = arith.constant dense<0.000000e+00> : vector<8x640xf32>
    %14 = tpu.matmul %12, %13, %cst_13 {dimension_numbers = #tpu.dot_dimension_numbers<[1], [0], [0], [1], [0, 0, 1, 1], [], []>} : vector<8x4xf32>, vector<4x640xf32>, vector<8x640xf32> -> vector<8x640xf32>
    %15 = arith.addf %10, %14 : vector<8x640xf32>
    %16 = vector.extract_strided_slice %9 {offsets = [1, 0, 0], sizes = [1, 8, 4], strides = [1, 1, 1]} : vector<2x8x4xf32> to vector<1x8x4xf32>
    %17 = vector.shape_cast %16 : vector<1x8x4xf32> to vector<8x4xf32>
    %c0_14 = arith.constant 0 : index
    %c128 = arith.constant 128 : index
    %18 = vector.load %arg11[%c0_14, %c128] : memref<4x768xf32, #tpu.memory_space<vmem>>, vector<4x640xf32>
    %cst_15 = arith.constant dense<0.000000e+00> : vector<8x640xf32>
    %19 = tpu.matmul %17, %18, %cst_15 {dimension_numbers = #tpu.dot_dimension_numbers<[1], [0], [0], [1], [0, 0, 1, 1], [], []>} : vector<8x4xf32>, vector<4x640xf32>, vector<8x640xf32> -> vector<8x640xf32>
    %20 = arith.addf %15, %19 : vector<8x640xf32>
    %c0_16 = arith.constant 0 : index
    %c0_17 = arith.constant 0 : index
    %21 = vector.load %arg5[%c0_16, %c0_17] : memref<8x1xf32, #tpu.memory_space<vmem>>, vector<8x1xf32>
    %22 = vector.broadcast %21 : vector<8x1xf32> to vector<8x640xf32>
    %23 = arith.addf %20, %22 : vector<8x640xf32>
    %cst_18 = arith.constant 0.000000e+00 : f32
    %24 = vector.broadcast %cst_18 : f32 to vector<8x640xf32>
    %25 = arith.maximumf %23, %24 : vector<8x640xf32>
    %c512_i32 = arith.constant 512 : i32
    %26 = arith.muli %arg1, %c512_i32 : i32
    %c128_i32 = arith.constant 128 : i32
    %27 = arith.subi %26, %c128_i32 : i32
    %28 = tpu.iota {dimensions = array<i32: 1>} : vector<1x640xi32>
    %29 = vector.broadcast %27 : i32 to vector<1x640xi32>
    %30 = arith.addi %29, %28 : vector<1x640xi32>
    %c0_i32_19 = arith.constant 0 : i32
    %31 = vector.broadcast %c0_i32_19 : i32 to vector<1x640xi32>
    %32 = arith.cmpi sge, %30, %31 : vector<1x640xi32>
    %cst_20 = arith.constant 0.000000e+00 : f32
    %33 = vector.shape_cast %32 : vector<1x640xi1> to vector<1x640xi1>
    %34 = vector.broadcast %33 : vector<1x640xi1> to vector<8x640xi1>
    %35 = vector.broadcast %cst_20 : f32 to vector<8x640xf32>
    %36 = arith.select %34, %25, %35 : vector<8x640xi1>, vector<8x640xf32>
    %c0_21 = arith.constant 0 : index
    %c0_22 = arith.constant 0 : index
    %c0_23 = arith.constant 0 : index
    %37 = vector.load %arg6[%c0_21, %c0_22, %c0_23] : memref<2x8x8xf32, #tpu.memory_space<vmem>>, vector<2x8x8xf32>
    %cst_24 = arith.constant 0.000000e+00 : f32
    %38 = vector.broadcast %cst_24 : f32 to vector<8x512xf32>
    %39 = vector.extract_strided_slice %37 {offsets = [0, 0, 0], sizes = [1, 8, 8], strides = [1, 1, 1]} : vector<2x8x8xf32> to vector<1x8x8xf32>
    %40 = vector.shape_cast %39 : vector<1x8x8xf32> to vector<8x8xf32>
    %41 = vector.extract_strided_slice %36 {offsets = [0, 127], sizes = [8, 512], strides = [1, 1]} : vector<8x640xf32> to vector<8x512xf32>
    %cst_25 = arith.constant dense<0.000000e+00> : vector<8x512xf32>
    %42 = tpu.matmul %40, %41, %cst_25 {dimension_numbers = #tpu.dot_dimension_numbers<[1], [0], [0], [1], [0, 0, 1, 1], [], []>} : vector<8x8xf32>, vector<8x512xf32>, vector<8x512xf32> -> vector<8x512xf32>
    %43 = arith.addf %38, %42 : vector<8x512xf32>
    %44 = vector.extract_strided_slice %37 {offsets = [1, 0, 0], sizes = [1, 8, 8], strides = [1, 1, 1]} : vector<2x8x8xf32> to vector<1x8x8xf32>
    %45 = vector.shape_cast %44 : vector<1x8x8xf32> to vector<8x8xf32>
    %46 = vector.extract_strided_slice %36 {offsets = [0, 128], sizes = [8, 512], strides = [1, 1]} : vector<8x640xf32> to vector<8x512xf32>
    %cst_26 = arith.constant dense<0.000000e+00> : vector<8x512xf32>
    %47 = tpu.matmul %45, %46, %cst_26 {dimension_numbers = #tpu.dot_dimension_numbers<[1], [0], [0], [1], [0, 0, 1, 1], [], []>} : vector<8x8xf32>, vector<8x512xf32>, vector<8x512xf32> -> vector<8x512xf32>
    %48 = arith.addf %43, %47 : vector<8x512xf32>
    %c0_27 = arith.constant 0 : index
    %c0_28 = arith.constant 0 : index
    %49 = vector.load %arg7[%c0_27, %c0_28] : memref<8x1xf32, #tpu.memory_space<vmem>>, vector<8x1xf32>
    %50 = vector.broadcast %49 : vector<8x1xf32> to vector<8x512xf32>
    %51 = arith.addf %48, %50 : vector<8x512xf32>
    %cst_29 = arith.constant 0.000000e+00 : f32
    %52 = vector.broadcast %cst_29 : f32 to vector<8x512xf32>
    %53 = arith.maximumf %51, %52 : vector<8x512xf32>
    %c0_30 = arith.constant 0 : index
    %c0_31 = arith.constant 0 : index
    %54 = vector.load %arg8[%c0_30, %c0_31] : memref<8x4xf32, #tpu.memory_space<vmem>>, vector<8x4xf32>
    %cst_32 = arith.constant dense<0.000000e+00> : vector<8x512xf32>
    %55 = tpu.matmul %54, %1, %cst_32 {dimension_numbers = #tpu.dot_dimension_numbers<[1], [0], [0], [1], [0, 0, 1, 1], [], []>} : vector<8x4xf32>, vector<4x512xf32>, vector<8x512xf32> -> vector<8x512xf32>
    %c0_33 = arith.constant 0 : index
    %c0_34 = arith.constant 0 : index
    %56 = vector.load %arg9[%c0_33, %c0_34] : memref<8x1xf32, #tpu.memory_space<vmem>>, vector<8x1xf32>
    %57 = vector.broadcast %56 : vector<8x1xf32> to vector<8x512xf32>
    %58 = arith.addf %55, %57 : vector<8x512xf32>
    %59 = arith.addf %53, %58 : vector<8x512xf32>
    %cst_35 = arith.constant 0.000000e+00 : f32
    %60 = vector.broadcast %cst_35 : f32 to vector<8x512xf32>
    %61 = arith.maximumf %59, %60 : vector<8x512xf32>
    %c0_36 = arith.constant 0 : index
    %c0_37 = arith.constant 0 : index
    %c0_38 = arith.constant 0 : index
    %62 = vector.load %arg10[%c0_36, %c0_37, %c0_38] : memref<1x8x512xf32, #tpu.memory_space<vmem>>, vector<1x8x512xf32>
    %63 = vector.shape_cast %62 : vector<1x8x512xf32> to vector<8x512xf32>
    %64 = vector.shape_cast %61 : vector<8x512xf32> to vector<1x8x512xf32>
    tpu.vector_store %arg10[%c0_36, %c0_37, %c0_38], %64 {strides = array<i32>} : memref<1x8x512xf32, #tpu.memory_space<vmem>>, vector<1x8x512xf32>,
    return
  }
  func.func @transform_0(%arg0: i32, %arg1: i32) -> (i32, i32, i32) {
    %c2_i32 = arith.constant 2 : i32
    %0 = arith.muli %arg1, %c2_i32 : i32
    %c1_i32 = arith.constant 1 : i32
    %1 = arith.subi %0, %c1_i32 : i32
    %c0_i32 = arith.constant 0 : i32
    %2 = arith.maxsi %1, %c0_i32 : i32
    %c0_i32_0 = arith.constant 0 : i32
    %c0_i32_1 = arith.constant 0 : i32
    return %arg0, %c0_i32_0, %2 : i32, i32, i32
  }
  func.func @transform_1(%arg0: i32, %arg1: i32) -> (i32, i32, i32) {
    %c0_i32 = arith.constant 0 : i32
    %c0_i32_0 = arith.constant 0 : i32
    return %arg0, %c0_i32, %arg1 : i32, i32, i32
  }
  func.func @transform_2(%arg0: i32, %arg1: i32) -> (i32, i32, i32) {
    %c0_i32 = arith.constant 0 : i32
    %c0_i32_0 = arith.constant 0 : i32
    %c0_i32_1 = arith.constant 0 : i32
    %c0_i32_2 = arith.constant 0 : i32
    return %c0_i32, %c0_i32_0, %c0_i32_1 : i32, i32, i32
  }
  func.func @transform_3(%arg0: i32, %arg1: i32) -> (i32, i32) {
    %c0_i32 = arith.constant 0 : i32
    %c0_i32_0 = arith.constant 0 : i32
    %c0_i32_1 = arith.constant 0 : i32
    return %c0_i32, %c0_i32_0 : i32, i32
  }
  func.func @transform_4(%arg0: i32, %arg1: i32) -> (i32, i32, i32) {
    %c0_i32 = arith.constant 0 : i32
    %c0_i32_0 = arith.constant 0 : i32
    %c0_i32_1 = arith.constant 0 : i32
    %c0_i32_2 = arith.constant 0 : i32
    return %c0_i32, %c0_i32_0, %c0_i32_1 : i32, i32, i32
  }
  func.func @transform_5(%arg0: i32, %arg1: i32) -> (i32, i32) {
    %c0_i32 = arith.constant 0 : i32
    %c0_i32_0 = arith.constant 0 : i32
    %c0_i32_1 = arith.constant 0 : i32
    return %c0_i32, %c0_i32_0 : i32, i32
  }
  func.func @transform_6(%arg0: i32, %arg1: i32) -> (i32, i32) {
    %c0_i32 = arith.constant 0 : i32
    %c0_i32_0 = arith.constant 0 : i32
    %c0_i32_1 = arith.constant 0 : i32
    return %c0_i32, %c0_i32_0 : i32, i32
  }
  func.func @transform_7(%arg0: i32, %arg1: i32) -> (i32, i32) {
    %c0_i32 = arith.constant 0 : i32
    %c0_i32_0 = arith.constant 0 : i32
    %c0_i32_1 = arith.constant 0 : i32
    return %c0_i32, %c0_i32_0 : i32, i32
  }
  func.func @transform_8(%arg0: i32, %arg1: i32) -> (i32, i32, i32) {
    %c0_i32 = arith.constant 0 : i32
    %c0_i32_0 = arith.constant 0 : i32
    return %arg0, %c0_i32, %arg1 : i32, i32, i32
  }
}

module attributes {stable_mosaic.version = 11 : i64} {
  func.func @_tcn_block_kernel(%arg0: i32, %arg1: i32, %arg2: memref<1x8x256xf32, #tpu.memory_space<vmem>>, %arg3: memref<1x8x512xf32, #tpu.memory_space<vmem>>, %arg4: memref<2x8x8xf32, #tpu.memory_space<vmem>>, %arg5: memref<8x1xf32, #tpu.memory_space<vmem>>, %arg6: memref<2x8x8xf32, #tpu.memory_space<vmem>>, %arg7: memref<8x1xf32, #tpu.memory_space<vmem>>, %arg8: memref<1x8x512xf32, #tpu.memory_space<vmem>>, %arg9: memref<8x768xf32, #tpu.memory_space<vmem>>) attributes {dimension_semantics = [#tpu.dimension_semantics<parallel>, #tpu.dimension_semantics<parallel>], iteration_bounds = array<i64: 2, 1>, scalar_prefetch = 0 : i64, scratch_operands = 1 : i64, tpu.core_type = #tpu.core_type<tc>, window_params = [{transform_indices = @transform_0, window_bounds = array<i64: 1, 8, 256>}, {transform_indices = @transform_1, window_bounds = array<i64: 1, 8, 512>}, {pipeline_mode = #tpu.pipeline_mode<synchronous>, transform_indices = @transform_2, window_bounds = array<i64: 2, 8, 8>}, {pipeline_mode = #tpu.pipeline_mode<synchronous>, transform_indices = @transform_3, window_bounds = array<i64: 8, 1>}, {pipeline_mode = #tpu.pipeline_mode<synchronous>, transform_indices = @transform_4, window_bounds = array<i64: 2, 8, 8>}, {pipeline_mode = #tpu.pipeline_mode<synchronous>, transform_indices = @transform_5, window_bounds = array<i64: 8, 1>}, {transform_indices = @transform_6, window_bounds = array<i64: 1, 8, 512>}]} {
    %c0 = arith.constant 0 : index
    %c0_0 = arith.constant 0 : index
    %c0_1 = arith.constant 0 : index
    %0 = vector.load %arg3[%c0, %c0_0, %c0_1] : memref<1x8x512xf32, #tpu.memory_space<vmem>>, vector<1x8x512xf32>
    %1 = vector.shape_cast %0 : vector<1x8x512xf32> to vector<8x512xf32>
    %c0_2 = arith.constant 0 : index
    %c0_3 = arith.constant 0 : index
    %c0_4 = arith.constant 0 : index
    %2 = vector.load %arg2[%c0_2, %c0_3, %c0_4] : memref<1x8x256xf32, #tpu.memory_space<vmem>>, vector<1x8x256xf32>
    %3 = vector.shape_cast %2 : vector<1x8x256xf32> to vector<8x256xf32>
    %c0_i32 = arith.constant 0 : i32
    %4 = arith.cmpi eq, %arg1, %c0_i32 : i32
    %cst = arith.constant 0.000000e+00 : f32
    %5 = vector.broadcast %cst : f32 to vector<8x256xf32>
    %6 = arith.select %4, %5, %3 : vector<8x256xf32>
    %c0_5 = arith.constant 0 : index
    %c0_6 = arith.constant 0 : index
    %7 = vector.load %arg9[%c0_5, %c0_6] : memref<8x768xf32, #tpu.memory_space<vmem>>, vector<8x256xf32>
    tpu.vector_store %arg9[%c0_5, %c0_6], %6 {strides = array<i32>} : memref<8x768xf32, #tpu.memory_space<vmem>>, vector<8x256xf32>,
    %c0_7 = arith.constant 0 : index
    %c256 = arith.constant 256 : index
    %8 = vector.load %arg9[%c0_7, %c256] : memref<8x768xf32, #tpu.memory_space<vmem>>, vector<8x512xf32>
    tpu.vector_store %arg9[%c0_7, %c256], %1 {strides = array<i32>} : memref<8x768xf32, #tpu.memory_space<vmem>>, vector<8x512xf32>,
    %c0_8 = arith.constant 0 : index
    %c0_9 = arith.constant 0 : index
    %c0_10 = arith.constant 0 : index
    %9 = vector.load %arg4[%c0_8, %c0_9, %c0_10] : memref<2x8x8xf32, #tpu.memory_space<vmem>>, vector<2x8x8xf32>
    %cst_11 = arith.constant 0.000000e+00 : f32
    %10 = vector.broadcast %cst_11 : f32 to vector<8x640xf32>
    %11 = vector.extract_strided_slice %9 {offsets = [0, 0, 0], sizes = [1, 8, 8], strides = [1, 1, 1]} : vector<2x8x8xf32> to vector<1x8x8xf32>
    %12 = vector.shape_cast %11 : vector<1x8x8xf32> to vector<8x8xf32>
    %c0_12 = arith.constant 0 : index
    %c126 = arith.constant 126 : index
    %13 = vector.load %arg9[%c0_12, %c126] : memref<8x768xf32, #tpu.memory_space<vmem>>, vector<8x640xf32>
    %cst_13 = arith.constant dense<0.000000e+00> : vector<8x640xf32>
    %14 = tpu.matmul %12, %13, %cst_13 {dimension_numbers = #tpu.dot_dimension_numbers<[1], [0], [0], [1], [0, 0, 1, 1], [], []>} : vector<8x8xf32>, vector<8x640xf32>, vector<8x640xf32> -> vector<8x640xf32>
    %15 = arith.addf %10, %14 : vector<8x640xf32>
    %16 = vector.extract_strided_slice %9 {offsets = [1, 0, 0], sizes = [1, 8, 8], strides = [1, 1, 1]} : vector<2x8x8xf32> to vector<1x8x8xf32>
    %17 = vector.shape_cast %16 : vector<1x8x8xf32> to vector<8x8xf32>
    %c0_14 = arith.constant 0 : index
    %c128 = arith.constant 128 : index
    %18 = vector.load %arg9[%c0_14, %c128] : memref<8x768xf32, #tpu.memory_space<vmem>>, vector<8x640xf32>
    %cst_15 = arith.constant dense<0.000000e+00> : vector<8x640xf32>
    %19 = tpu.matmul %17, %18, %cst_15 {dimension_numbers = #tpu.dot_dimension_numbers<[1], [0], [0], [1], [0, 0, 1, 1], [], []>} : vector<8x8xf32>, vector<8x640xf32>, vector<8x640xf32> -> vector<8x640xf32>
    %20 = arith.addf %15, %19 : vector<8x640xf32>
    %c0_16 = arith.constant 0 : index
    %c0_17 = arith.constant 0 : index
    %21 = vector.load %arg5[%c0_16, %c0_17] : memref<8x1xf32, #tpu.memory_space<vmem>>, vector<8x1xf32>
    %22 = vector.broadcast %21 : vector<8x1xf32> to vector<8x640xf32>
    %23 = arith.addf %20, %22 : vector<8x640xf32>
    %cst_18 = arith.constant 0.000000e+00 : f32
    %24 = vector.broadcast %cst_18 : f32 to vector<8x640xf32>
    %25 = arith.maximumf %23, %24 : vector<8x640xf32>
    %c512_i32 = arith.constant 512 : i32
    %26 = arith.muli %arg1, %c512_i32 : i32
    %c128_i32 = arith.constant 128 : i32
    %27 = arith.subi %26, %c128_i32 : i32
    %28 = tpu.iota {dimensions = array<i32: 1>} : vector<1x640xi32>
    %29 = vector.broadcast %27 : i32 to vector<1x640xi32>
    %30 = arith.addi %29, %28 : vector<1x640xi32>
    %c0_i32_19 = arith.constant 0 : i32
    %31 = vector.broadcast %c0_i32_19 : i32 to vector<1x640xi32>
    %32 = arith.cmpi sge, %30, %31 : vector<1x640xi32>
    %cst_20 = arith.constant 0.000000e+00 : f32
    %33 = vector.shape_cast %32 : vector<1x640xi1> to vector<1x640xi1>
    %34 = vector.broadcast %33 : vector<1x640xi1> to vector<8x640xi1>
    %35 = vector.broadcast %cst_20 : f32 to vector<8x640xf32>
    %36 = arith.select %34, %25, %35 : vector<8x640xi1>, vector<8x640xf32>
    %c0_21 = arith.constant 0 : index
    %c0_22 = arith.constant 0 : index
    %c0_23 = arith.constant 0 : index
    %37 = vector.load %arg6[%c0_21, %c0_22, %c0_23] : memref<2x8x8xf32, #tpu.memory_space<vmem>>, vector<2x8x8xf32>
    %cst_24 = arith.constant 0.000000e+00 : f32
    %38 = vector.broadcast %cst_24 : f32 to vector<8x512xf32>
    %39 = vector.extract_strided_slice %37 {offsets = [0, 0, 0], sizes = [1, 8, 8], strides = [1, 1, 1]} : vector<2x8x8xf32> to vector<1x8x8xf32>
    %40 = vector.shape_cast %39 : vector<1x8x8xf32> to vector<8x8xf32>
    %41 = vector.extract_strided_slice %36 {offsets = [0, 126], sizes = [8, 512], strides = [1, 1]} : vector<8x640xf32> to vector<8x512xf32>
    %cst_25 = arith.constant dense<0.000000e+00> : vector<8x512xf32>
    %42 = tpu.matmul %40, %41, %cst_25 {dimension_numbers = #tpu.dot_dimension_numbers<[1], [0], [0], [1], [0, 0, 1, 1], [], []>} : vector<8x8xf32>, vector<8x512xf32>, vector<8x512xf32> -> vector<8x512xf32>
    %43 = arith.addf %38, %42 : vector<8x512xf32>
    %44 = vector.extract_strided_slice %37 {offsets = [1, 0, 0], sizes = [1, 8, 8], strides = [1, 1, 1]} : vector<2x8x8xf32> to vector<1x8x8xf32>
    %45 = vector.shape_cast %44 : vector<1x8x8xf32> to vector<8x8xf32>
    %46 = vector.extract_strided_slice %36 {offsets = [0, 128], sizes = [8, 512], strides = [1, 1]} : vector<8x640xf32> to vector<8x512xf32>
    %cst_26 = arith.constant dense<0.000000e+00> : vector<8x512xf32>
    %47 = tpu.matmul %45, %46, %cst_26 {dimension_numbers = #tpu.dot_dimension_numbers<[1], [0], [0], [1], [0, 0, 1, 1], [], []>} : vector<8x8xf32>, vector<8x512xf32>, vector<8x512xf32> -> vector<8x512xf32>
    %48 = arith.addf %43, %47 : vector<8x512xf32>
    %c0_27 = arith.constant 0 : index
    %c0_28 = arith.constant 0 : index
    %49 = vector.load %arg7[%c0_27, %c0_28] : memref<8x1xf32, #tpu.memory_space<vmem>>, vector<8x1xf32>
    %50 = vector.broadcast %49 : vector<8x1xf32> to vector<8x512xf32>
    %51 = arith.addf %48, %50 : vector<8x512xf32>
    %cst_29 = arith.constant 0.000000e+00 : f32
    %52 = vector.broadcast %cst_29 : f32 to vector<8x512xf32>
    %53 = arith.maximumf %51, %52 : vector<8x512xf32>
    %54 = arith.addf %53, %1 : vector<8x512xf32>
    %cst_30 = arith.constant 0.000000e+00 : f32
    %55 = vector.broadcast %cst_30 : f32 to vector<8x512xf32>
    %56 = arith.maximumf %54, %55 : vector<8x512xf32>
    %c0_31 = arith.constant 0 : index
    %c0_32 = arith.constant 0 : index
    %c0_33 = arith.constant 0 : index
    %57 = vector.load %arg8[%c0_31, %c0_32, %c0_33] : memref<1x8x512xf32, #tpu.memory_space<vmem>>, vector<1x8x512xf32>
    %58 = vector.shape_cast %57 : vector<1x8x512xf32> to vector<8x512xf32>
    %59 = vector.shape_cast %56 : vector<8x512xf32> to vector<1x8x512xf32>
    tpu.vector_store %arg8[%c0_31, %c0_32, %c0_33], %59 {strides = array<i32>} : memref<1x8x512xf32, #tpu.memory_space<vmem>>, vector<1x8x512xf32>,
    return
  }
  func.func @transform_0(%arg0: i32, %arg1: i32) -> (i32, i32, i32) {
    %c2_i32 = arith.constant 2 : i32
    %0 = arith.muli %arg1, %c2_i32 : i32
    %c1_i32 = arith.constant 1 : i32
    %1 = arith.subi %0, %c1_i32 : i32
    %c0_i32 = arith.constant 0 : i32
    %2 = arith.maxsi %1, %c0_i32 : i32
    %c0_i32_0 = arith.constant 0 : i32
    %c0_i32_1 = arith.constant 0 : i32
    return %arg0, %c0_i32_0, %2 : i32, i32, i32
  }
  func.func @transform_1(%arg0: i32, %arg1: i32) -> (i32, i32, i32) {
    %c0_i32 = arith.constant 0 : i32
    %c0_i32_0 = arith.constant 0 : i32
    return %arg0, %c0_i32, %arg1 : i32, i32, i32
  }
  func.func @transform_2(%arg0: i32, %arg1: i32) -> (i32, i32, i32) {
    %c0_i32 = arith.constant 0 : i32
    %c0_i32_0 = arith.constant 0 : i32
    %c0_i32_1 = arith.constant 0 : i32
    %c0_i32_2 = arith.constant 0 : i32
    return %c0_i32, %c0_i32_0, %c0_i32_1 : i32, i32, i32
  }
  func.func @transform_3(%arg0: i32, %arg1: i32) -> (i32, i32) {
    %c0_i32 = arith.constant 0 : i32
    %c0_i32_0 = arith.constant 0 : i32
    %c0_i32_1 = arith.constant 0 : i32
    return %c0_i32, %c0_i32_0 : i32, i32
  }
  func.func @transform_4(%arg0: i32, %arg1: i32) -> (i32, i32, i32) {
    %c0_i32 = arith.constant 0 : i32
    %c0_i32_0 = arith.constant 0 : i32
    %c0_i32_1 = arith.constant 0 : i32
    %c0_i32_2 = arith.constant 0 : i32
    return %c0_i32, %c0_i32_0, %c0_i32_1 : i32, i32, i32
  }
  func.func @transform_5(%arg0: i32, %arg1: i32) -> (i32, i32) {
    %c0_i32 = arith.constant 0 : i32
    %c0_i32_0 = arith.constant 0 : i32
    %c0_i32_1 = arith.constant 0 : i32
    return %c0_i32, %c0_i32_0 : i32, i32
  }
  func.func @transform_6(%arg0: i32, %arg1: i32) -> (i32, i32, i32) {
    %c0_i32 = arith.constant 0 : i32
    %c0_i32_0 = arith.constant 0 : i32
    return %arg0, %c0_i32, %arg1 : i32, i32, i32
  }
}

module attributes {stable_mosaic.version = 11 : i64} {
  func.func @_tcn_block_kernel(%arg0: i32, %arg1: i32, %arg2: memref<1x8x256xf32, #tpu.memory_space<vmem>>, %arg3: memref<1x8x512xf32, #tpu.memory_space<vmem>>, %arg4: memref<2x4x8xf32, #tpu.memory_space<vmem>>, %arg5: memref<4x1xf32, #tpu.memory_space<vmem>>, %arg6: memref<2x4x4xf32, #tpu.memory_space<vmem>>, %arg7: memref<4x1xf32, #tpu.memory_space<vmem>>, %arg8: memref<4x8xf32, #tpu.memory_space<vmem>>, %arg9: memref<4x1xf32, #tpu.memory_space<vmem>>, %arg10: memref<1x4x512xf32, #tpu.memory_space<vmem>>, %arg11: memref<8x768xf32, #tpu.memory_space<vmem>>) attributes {dimension_semantics = [#tpu.dimension_semantics<parallel>, #tpu.dimension_semantics<parallel>], iteration_bounds = array<i64: 2, 1>, scalar_prefetch = 0 : i64, scratch_operands = 1 : i64, tpu.core_type = #tpu.core_type<tc>, window_params = [{transform_indices = @transform_0, window_bounds = array<i64: 1, 8, 256>}, {transform_indices = @transform_1, window_bounds = array<i64: 1, 8, 512>}, {pipeline_mode = #tpu.pipeline_mode<synchronous>, transform_indices = @transform_2, window_bounds = array<i64: 2, 4, 8>}, {pipeline_mode = #tpu.pipeline_mode<synchronous>, transform_indices = @transform_3, window_bounds = array<i64: 4, 1>}, {pipeline_mode = #tpu.pipeline_mode<synchronous>, transform_indices = @transform_4, window_bounds = array<i64: 2, 4, 4>}, {pipeline_mode = #tpu.pipeline_mode<synchronous>, transform_indices = @transform_5, window_bounds = array<i64: 4, 1>}, {pipeline_mode = #tpu.pipeline_mode<synchronous>, transform_indices = @transform_6, window_bounds = array<i64: 4, 8>}, {pipeline_mode = #tpu.pipeline_mode<synchronous>, transform_indices = @transform_7, window_bounds = array<i64: 4, 1>}, {transform_indices = @transform_8, window_bounds = array<i64: 1, 4, 512>}]} {
    %c0 = arith.constant 0 : index
    %c0_0 = arith.constant 0 : index
    %c0_1 = arith.constant 0 : index
    %0 = vector.load %arg3[%c0, %c0_0, %c0_1] : memref<1x8x512xf32, #tpu.memory_space<vmem>>, vector<1x8x512xf32>
    %1 = vector.shape_cast %0 : vector<1x8x512xf32> to vector<8x512xf32>
    %c0_2 = arith.constant 0 : index
    %c0_3 = arith.constant 0 : index
    %c0_4 = arith.constant 0 : index
    %2 = vector.load %arg2[%c0_2, %c0_3, %c0_4] : memref<1x8x256xf32, #tpu.memory_space<vmem>>, vector<1x8x256xf32>
    %3 = vector.shape_cast %2 : vector<1x8x256xf32> to vector<8x256xf32>
    %c0_i32 = arith.constant 0 : i32
    %4 = arith.cmpi eq, %arg1, %c0_i32 : i32
    %cst = arith.constant 0.000000e+00 : f32
    %5 = vector.broadcast %cst : f32 to vector<8x256xf32>
    %6 = arith.select %4, %5, %3 : vector<8x256xf32>
    %c0_5 = arith.constant 0 : index
    %c0_6 = arith.constant 0 : index
    %7 = vector.load %arg11[%c0_5, %c0_6] : memref<8x768xf32, #tpu.memory_space<vmem>>, vector<8x256xf32>
    tpu.vector_store %arg11[%c0_5, %c0_6], %6 {strides = array<i32>} : memref<8x768xf32, #tpu.memory_space<vmem>>, vector<8x256xf32>,
    %c0_7 = arith.constant 0 : index
    %c256 = arith.constant 256 : index
    %8 = vector.load %arg11[%c0_7, %c256] : memref<8x768xf32, #tpu.memory_space<vmem>>, vector<8x512xf32>
    tpu.vector_store %arg11[%c0_7, %c256], %1 {strides = array<i32>} : memref<8x768xf32, #tpu.memory_space<vmem>>, vector<8x512xf32>,
    %c0_8 = arith.constant 0 : index
    %c0_9 = arith.constant 0 : index
    %c0_10 = arith.constant 0 : index
    %9 = vector.load %arg4[%c0_8, %c0_9, %c0_10] : memref<2x4x8xf32, #tpu.memory_space<vmem>>, vector<2x4x8xf32>
    %cst_11 = arith.constant 0.000000e+00 : f32
    %10 = vector.broadcast %cst_11 : f32 to vector<4x640xf32>
    %11 = vector.extract_strided_slice %9 {offsets = [0, 0, 0], sizes = [1, 4, 8], strides = [1, 1, 1]} : vector<2x4x8xf32> to vector<1x4x8xf32>
    %12 = vector.shape_cast %11 : vector<1x4x8xf32> to vector<4x8xf32>
    %c0_12 = arith.constant 0 : index
    %c124 = arith.constant 124 : index
    %13 = vector.load %arg11[%c0_12, %c124] : memref<8x768xf32, #tpu.memory_space<vmem>>, vector<8x640xf32>
    %cst_13 = arith.constant dense<0.000000e+00> : vector<4x640xf32>
    %14 = tpu.matmul %12, %13, %cst_13 {dimension_numbers = #tpu.dot_dimension_numbers<[1], [0], [0], [1], [0, 0, 1, 1], [], []>} : vector<4x8xf32>, vector<8x640xf32>, vector<4x640xf32> -> vector<4x640xf32>
    %15 = arith.addf %10, %14 : vector<4x640xf32>
    %16 = vector.extract_strided_slice %9 {offsets = [1, 0, 0], sizes = [1, 4, 8], strides = [1, 1, 1]} : vector<2x4x8xf32> to vector<1x4x8xf32>
    %17 = vector.shape_cast %16 : vector<1x4x8xf32> to vector<4x8xf32>
    %c0_14 = arith.constant 0 : index
    %c128 = arith.constant 128 : index
    %18 = vector.load %arg11[%c0_14, %c128] : memref<8x768xf32, #tpu.memory_space<vmem>>, vector<8x640xf32>
    %cst_15 = arith.constant dense<0.000000e+00> : vector<4x640xf32>
    %19 = tpu.matmul %17, %18, %cst_15 {dimension_numbers = #tpu.dot_dimension_numbers<[1], [0], [0], [1], [0, 0, 1, 1], [], []>} : vector<4x8xf32>, vector<8x640xf32>, vector<4x640xf32> -> vector<4x640xf32>
    %20 = arith.addf %15, %19 : vector<4x640xf32>
    %c0_16 = arith.constant 0 : index
    %c0_17 = arith.constant 0 : index
    %21 = vector.load %arg5[%c0_16, %c0_17] : memref<4x1xf32, #tpu.memory_space<vmem>>, vector<4x1xf32>
    %22 = vector.broadcast %21 : vector<4x1xf32> to vector<4x640xf32>
    %23 = arith.addf %20, %22 : vector<4x640xf32>
    %cst_18 = arith.constant 0.000000e+00 : f32
    %24 = vector.broadcast %cst_18 : f32 to vector<4x640xf32>
    %25 = arith.maximumf %23, %24 : vector<4x640xf32>
    %c512_i32 = arith.constant 512 : i32
    %26 = arith.muli %arg1, %c512_i32 : i32
    %c128_i32 = arith.constant 128 : i32
    %27 = arith.subi %26, %c128_i32 : i32
    %28 = tpu.iota {dimensions = array<i32: 1>} : vector<1x640xi32>
    %29 = vector.broadcast %27 : i32 to vector<1x640xi32>
    %30 = arith.addi %29, %28 : vector<1x640xi32>
    %c0_i32_19 = arith.constant 0 : i32
    %31 = vector.broadcast %c0_i32_19 : i32 to vector<1x640xi32>
    %32 = arith.cmpi sge, %30, %31 : vector<1x640xi32>
    %cst_20 = arith.constant 0.000000e+00 : f32
    %33 = vector.shape_cast %32 : vector<1x640xi1> to vector<1x640xi1>
    %34 = vector.broadcast %33 : vector<1x640xi1> to vector<4x640xi1>
    %35 = vector.broadcast %cst_20 : f32 to vector<4x640xf32>
    %36 = arith.select %34, %25, %35 : vector<4x640xi1>, vector<4x640xf32>
    %c0_21 = arith.constant 0 : index
    %c0_22 = arith.constant 0 : index
    %c0_23 = arith.constant 0 : index
    %37 = vector.load %arg6[%c0_21, %c0_22, %c0_23] : memref<2x4x4xf32, #tpu.memory_space<vmem>>, vector<2x4x4xf32>
    %cst_24 = arith.constant 0.000000e+00 : f32
    %38 = vector.broadcast %cst_24 : f32 to vector<4x512xf32>
    %39 = vector.extract_strided_slice %37 {offsets = [0, 0, 0], sizes = [1, 4, 4], strides = [1, 1, 1]} : vector<2x4x4xf32> to vector<1x4x4xf32>
    %40 = vector.shape_cast %39 : vector<1x4x4xf32> to vector<4x4xf32>
    %41 = vector.extract_strided_slice %36 {offsets = [0, 124], sizes = [4, 512], strides = [1, 1]} : vector<4x640xf32> to vector<4x512xf32>
    %cst_25 = arith.constant dense<0.000000e+00> : vector<4x512xf32>
    %42 = tpu.matmul %40, %41, %cst_25 {dimension_numbers = #tpu.dot_dimension_numbers<[1], [0], [0], [1], [0, 0, 1, 1], [], []>} : vector<4x4xf32>, vector<4x512xf32>, vector<4x512xf32> -> vector<4x512xf32>
    %43 = arith.addf %38, %42 : vector<4x512xf32>
    %44 = vector.extract_strided_slice %37 {offsets = [1, 0, 0], sizes = [1, 4, 4], strides = [1, 1, 1]} : vector<2x4x4xf32> to vector<1x4x4xf32>
    %45 = vector.shape_cast %44 : vector<1x4x4xf32> to vector<4x4xf32>
    %46 = vector.extract_strided_slice %36 {offsets = [0, 128], sizes = [4, 512], strides = [1, 1]} : vector<4x640xf32> to vector<4x512xf32>
    %cst_26 = arith.constant dense<0.000000e+00> : vector<4x512xf32>
    %47 = tpu.matmul %45, %46, %cst_26 {dimension_numbers = #tpu.dot_dimension_numbers<[1], [0], [0], [1], [0, 0, 1, 1], [], []>} : vector<4x4xf32>, vector<4x512xf32>, vector<4x512xf32> -> vector<4x512xf32>
    %48 = arith.addf %43, %47 : vector<4x512xf32>
    %c0_27 = arith.constant 0 : index
    %c0_28 = arith.constant 0 : index
    %49 = vector.load %arg7[%c0_27, %c0_28] : memref<4x1xf32, #tpu.memory_space<vmem>>, vector<4x1xf32>
    %50 = vector.broadcast %49 : vector<4x1xf32> to vector<4x512xf32>
    %51 = arith.addf %48, %50 : vector<4x512xf32>
    %cst_29 = arith.constant 0.000000e+00 : f32
    %52 = vector.broadcast %cst_29 : f32 to vector<4x512xf32>
    %53 = arith.maximumf %51, %52 : vector<4x512xf32>
    %c0_30 = arith.constant 0 : index
    %c0_31 = arith.constant 0 : index
    %54 = vector.load %arg8[%c0_30, %c0_31] : memref<4x8xf32, #tpu.memory_space<vmem>>, vector<4x8xf32>
    %cst_32 = arith.constant dense<0.000000e+00> : vector<4x512xf32>
    %55 = tpu.matmul %54, %1, %cst_32 {dimension_numbers = #tpu.dot_dimension_numbers<[1], [0], [0], [1], [0, 0, 1, 1], [], []>} : vector<4x8xf32>, vector<8x512xf32>, vector<4x512xf32> -> vector<4x512xf32>
    %c0_33 = arith.constant 0 : index
    %c0_34 = arith.constant 0 : index
    %56 = vector.load %arg9[%c0_33, %c0_34] : memref<4x1xf32, #tpu.memory_space<vmem>>, vector<4x1xf32>
    %57 = vector.broadcast %56 : vector<4x1xf32> to vector<4x512xf32>
    %58 = arith.addf %55, %57 : vector<4x512xf32>
    %59 = arith.addf %53, %58 : vector<4x512xf32>
    %cst_35 = arith.constant 0.000000e+00 : f32
    %60 = vector.broadcast %cst_35 : f32 to vector<4x512xf32>
    %61 = arith.maximumf %59, %60 : vector<4x512xf32>
    %c0_36 = arith.constant 0 : index
    %c0_37 = arith.constant 0 : index
    %c0_38 = arith.constant 0 : index
    %62 = vector.load %arg10[%c0_36, %c0_37, %c0_38] : memref<1x4x512xf32, #tpu.memory_space<vmem>>, vector<1x4x512xf32>
    %63 = vector.shape_cast %62 : vector<1x4x512xf32> to vector<4x512xf32>
    %64 = vector.shape_cast %61 : vector<4x512xf32> to vector<1x4x512xf32>
    tpu.vector_store %arg10[%c0_36, %c0_37, %c0_38], %64 {strides = array<i32>} : memref<1x4x512xf32, #tpu.memory_space<vmem>>, vector<1x4x512xf32>,
    return
  }
  func.func @transform_0(%arg0: i32, %arg1: i32) -> (i32, i32, i32) {
    %c2_i32 = arith.constant 2 : i32
    %0 = arith.muli %arg1, %c2_i32 : i32
    %c1_i32 = arith.constant 1 : i32
    %1 = arith.subi %0, %c1_i32 : i32
    %c0_i32 = arith.constant 0 : i32
    %2 = arith.maxsi %1, %c0_i32 : i32
    %c0_i32_0 = arith.constant 0 : i32
    %c0_i32_1 = arith.constant 0 : i32
    return %arg0, %c0_i32_0, %2 : i32, i32, i32
  }
  func.func @transform_1(%arg0: i32, %arg1: i32) -> (i32, i32, i32) {
    %c0_i32 = arith.constant 0 : i32
    %c0_i32_0 = arith.constant 0 : i32
    return %arg0, %c0_i32, %arg1 : i32, i32, i32
  }
  func.func @transform_2(%arg0: i32, %arg1: i32) -> (i32, i32, i32) {
    %c0_i32 = arith.constant 0 : i32
    %c0_i32_0 = arith.constant 0 : i32
    %c0_i32_1 = arith.constant 0 : i32
    %c0_i32_2 = arith.constant 0 : i32
    return %c0_i32, %c0_i32_0, %c0_i32_1 : i32, i32, i32
  }
  func.func @transform_3(%arg0: i32, %arg1: i32) -> (i32, i32) {
    %c0_i32 = arith.constant 0 : i32
    %c0_i32_0 = arith.constant 0 : i32
    %c0_i32_1 = arith.constant 0 : i32
    return %c0_i32, %c0_i32_0 : i32, i32
  }
  func.func @transform_4(%arg0: i32, %arg1: i32) -> (i32, i32, i32) {
    %c0_i32 = arith.constant 0 : i32
    %c0_i32_0 = arith.constant 0 : i32
    %c0_i32_1 = arith.constant 0 : i32
    %c0_i32_2 = arith.constant 0 : i32
    return %c0_i32, %c0_i32_0, %c0_i32_1 : i32, i32, i32
  }
  func.func @transform_5(%arg0: i32, %arg1: i32) -> (i32, i32) {
    %c0_i32 = arith.constant 0 : i32
    %c0_i32_0 = arith.constant 0 : i32
    %c0_i32_1 = arith.constant 0 : i32
    return %c0_i32, %c0_i32_0 : i32, i32
  }
  func.func @transform_6(%arg0: i32, %arg1: i32) -> (i32, i32) {
    %c0_i32 = arith.constant 0 : i32
    %c0_i32_0 = arith.constant 0 : i32
    %c0_i32_1 = arith.constant 0 : i32
    return %c0_i32, %c0_i32_0 : i32, i32
  }
  func.func @transform_7(%arg0: i32, %arg1: i32) -> (i32, i32) {
    %c0_i32 = arith.constant 0 : i32
    %c0_i32_0 = arith.constant 0 : i32
    %c0_i32_1 = arith.constant 0 : i32
    return %c0_i32, %c0_i32_0 : i32, i32
  }
  func.func @transform_8(%arg0: i32, %arg1: i32) -> (i32, i32, i32) {
    %c0_i32 = arith.constant 0 : i32
    %c0_i32_0 = arith.constant 0 : i32
    return %arg0, %c0_i32, %arg1 : i32, i32, i32
  }
}

</mosaic_0001>

<bundles_post_ra>
// kernel: temporal_conv_net.4
= control target key start
LH: loop header
LB: loop body
LE: loop exit
PB: predicated region body
PF: predicated region fallthrough
CT: control target
= control target key end

     0   :  { %s1481_s21 = smov 0   ;;  %s1483_s0 = smov 0   ;;  %s1603_s0 = inlined_call_operand.vmem [shape: f32[2,8,512], index: 0, kind: input, shape index: {}, may-alias: {0,1}]   ;;  %s1604_s1 = inlined_call_operand.vmem [shape: f32[2,8,512], index: 1, kind: input, shape index: {}, may-alias: {0,1}]   ;;  %s1605_s2 = inlined_call_operand.vmem [shape: f32[2,8,8], index: 2, kind: input, shape index: {}]   ;;  %s1606_s3 = inlined_call_operand.vmem [shape: f32[8,1], index: 3, kind: input, shape index: {}]   ;;  %s1607_s4 = inlined_call_operand.vmem [shape: f32[2,8,8], index: 4, kind: input, shape index: {}]   ;;  %s1608_s5 = inlined_call_operand.vmem [shape: f32[8,1], index: 5, kind: input, shape index: {}]   ;;  %s1609_s6 = inlined_call_operand.vmem [shape: f32[2,8,512], index: 6, kind: output, shape index: {}]  }
   0x1   :  { %s1485_s22 = smov 0  }
   0x2 LB: > { %s28_s23 = sadd.s32 1, %s1436_s0  ;;  %p1341_p0 = scmp.ge.s32.totalorder %s1440_s22, 1  ;;  %s1440_s22 = sphi %s1485_s22, %s16_s22   ;;  %s1436_s0 = sphi %s1483_s0, %s1611_s0   ;;  %s1432_s21 = sphi %s1481_s21, %s1610_s21  }
   0x3   : > { %p30_p1 = scmp.ge.s32.totalorder %s28_s23, 2  ;;  %p266_p2 = scmp.lt.s32.totalorder %s1440_s22, 3 }
   0x5   : > { %s1613_s23 = smov (%p30_p1, %s28_s23), 0  ;;  %p267_p3 = pnand %p1341_p0, %p266_p2 }
   0x6   : > { %p336_p4 = scmp.lt.s32.totalorder (!%p267_p3), %s1432_s21, 1  ;;  %v1442_v0 = vmov (!%p267_p3), 0.0   ;;  %v1443_v1 = vmov (!%p267_p3), 0   ;;  %s1444_s24 = smov (!%p267_p3), 2   ;;  %v374_v5 = vld [vmem:[%s1605_s2 + $0x8] sm:$0xff] (!%p267_p3)  ;;  %vm381_vm0 = vcmask (!%p267_p3), 64512  }
   0x7   : > { %270 = sbr.rel (%p267_p3) target bundleno = 702 (0x2be), region = 44  ;;  %449 = vmatprep.mubr.f32.mxu0 (!%p267_p3), %v1442_v0  ;;  %520 = vmatprep.mubr.f32.mxu1 (!%p267_p3), %v1442_v0  ;;  %vm1445_vm1 = vmmov (!%p267_p3), 0   ;;  %v841_v7 = vld [vmem:[%s1606_s3] sm:$0xff] (!%p267_p3)  ;;  %vm615_vm2 = vcmask (!%p267_p3), 15360   ;;  %v892_v42 = vld [vmem:[%s1607_s4 + $0x8] sm:$0xff] (!%p267_p3) }
   0x8   : > { %1416 = vset.pattern.permute.xlu1 (!%p267_p3), %v1443_v1  ;;  %1417 = vset.pattern.permute.xlu0 (!%p267_p3), %v1443_v1  ;;  %v373_v14 = vld [vmem:[%s1605_s2] sm:$0xff] (!%p267_p3) }
   0x9   : > { %1412 = vrot.lane.b32.xlu0 (!%p267_p3), %v1442_v0, %s1444_s24  ;;  %v1206_v43 = vld [vmem:[%s1608_s5] sm:$0xff] (!%p267_p3) }
   0xa   : > { %v891_v50 = vld [vmem:[%s1607_s4] sm:$0xff] (!%p267_p3) }
   0xe   : > { %s1615_s21 = smov (!%p336_p4, %s1432_s21), 1 }
   0xf   : > { %s1361_s25 = sshll.u32 %s1615_s21, 5 }
  0x10   : > { %s343_s28 = scalar_lea.vmem %s1604_s1, %s1361_s25  ;;  %s353_s19 = scalar_lea.vmem %s1609_s6, %s1361_s25 }
  0x11   : > { %v1511_v2 = vld [vmem:[%s343_s28 + $0x8] sm:$0xff]  ;;  %v1513_v3 = vld [vmem:[%s343_s28] sm:$0xff]  ;;  %v1519_v4 = vld [vmem:[%s343_s28 + $0x10] sm:$0xff] }
  0x12   : > { %609 = vrot.lane.b32.xlu1 %v1511_v2, %s1444_s24  ;;  %607 = vrot.lane.b32.xlu0 %v1513_v3, %s1444_s24  ;;  %v1524_v6 = vld [vmem:[%s343_s28 + $0x18] sm:$0xff] }
  0x13   : > { %385 = vmatprep.subr.mxu0 %v1513_v3  ;;  %456 = vmatprep.subr.mxu1 %v1519_v4 }
  0x14   : > { %386 = vmatpush1.msra.mxu0 %v1442_v0  ;;  %457 = vmatpush1.msra.mxu1 %v1511_v2 }
  0x15   : > { %1348 = vmatmul.mubr.msk.f32.vlgmr.msra.gmra.mrb[0].mxu0 %vm381_vm0, %v374_v5  ;;  %1349 = vmatmul.mubr.msk.f32.vlgmr.msra.gmra.mrb[0].mxu1 %vm381_vm0, %v374_v5 }
  0x16   : > { %611 = vrot.lane.b32.xlu1 %v1519_v4, %s1444_s24  ;;  %613 = vrot.lane.b32.xlu0 %v1524_v6, %s1444_s24 }
  0x17   : > { %1367 = vmatprep.subr.mxu0 %v1442_v0  ;;  %1369 = vmatprep.mubr.msk.f32.mxu0 %vm1445_vm1, %v1442_v0 }
  0x18   : > { %1368 = vmatpush3.msra.mxu0 %v1524_v6  ;;  %693 = vmatprep.mubr.f32.mxu1 %v1442_v0 }
  0x19   : > { %1370 = vmatmul.mubr.msk.f32.vlgmr.msra.gmra.mrb[2].mxu0 %vm381_vm0, %v374_v5  ;;  %1372 = vmatprep.subr.mxu0 %v1442_v0 }
  0x1a   : > { %1374 = vmatprep.mubr.msk.f32.mxu0 %vm1445_vm1, %v1442_v0  ;;  %844 = vperm.xlu1 %1416, %v841_v7  }
  0x7b   : > { %v1413_v8 = vpop.permute.xlu0 %1412 }
  0x7c   : > { %v1415_v9 = vunpack.i.h.bf16 %v1413_v8  ;;  %v1414_v10 = vunpack.i.l.bf16 %v1413_v8 }
  0x7e   : > { %v616_v15 = vsel %vm615_vm2, %v1415_v9, %v1414_v10 }
  0x84   : > { %v610_v11 = vpop.permute.xlu1 %609  ;;  %v608_v12 = vpop.permute.xlu0 %607 }
  0x85   : > { %v617_v13 = vsel %vm615_vm2, %v1414_v10, %v608_v12  ;;  %v618_v20 = vsel %vm615_vm2, %v608_v12, %v610_v11 }
  0x86   : > { %629 = vmatprep.subr.mxu1 %v617_v13 }
  0x87   : > { %630 = vmatpush1.msra.mxu1 %v616_v15 }
  0x88   : > { %v612_v16 = vpop.permute.xlu1 %611  ;;  %1351 = vmatmul.mubr.msk.f32.vlgmr.msra.gmra.mrb[2].mxu1 %vm381_vm0, %v373_v14  ;;  %v614_v17 = vpop.permute.xlu0 %613 }
  0x89   : > { %v620_v18 = vsel %vm615_vm2, %v612_v16, %v614_v17  ;;  %v619_v19 = vsel %vm615_vm2, %v610_v11, %v612_v16  ;;  %764 = vmatprep.mubr.f32.mxu1 %v1442_v0 }
  0x8a   : > { %700 = vmatprep.subr.mxu1 %v619_v19  ;;  %1373 = vmatpush3.msra.mxu0 %v620_v18 }
  0x8b   : > { %701 = vmatpush1.msra.mxu1 %v618_v20  ;;  %1375 = vmatmul.mubr.msk.f32.vlgmr.msra.gmra.mrb[4].mxu0 %vm381_vm0, %v373_v14 }
  0x8c   : > { %1352 = vmatmul.mubr.msk.f32.vlgmr.msra.gmra.mrb[0].mxu1 %vm381_vm0, %v373_v14  ;;  %960 = vmatprep.mubr.f32.mxu0 %v1442_v0 }
  0x8d   : > { %1031 = vmatprep.mubr.f32.mxu1 %v1442_v0 }
  0x99   : > { %v845_v27 = vpop.permute.xlu1 %844 }
  0xe8   : > { %v451_v21 = vpop.f32.mrb[0].mxu0 }
  0xe9   : > { %v453_v22 = vpop.f32.mrb[1].mxu0 }
  0xec   : > { %v593_v23 = vpop.f32.mrb[2].mxu0 }
  0xed   : > { %v1371_v24 = vpop.f32.mrb[3].mxu0 }
 0x15b   : > { %v695_v25 = vpop.f32.mrb[2].mxu1 }
 0x15c   : > { %v697_v26 = vpop.f32.mrb[3].mxu1 }
 0x15d   : > { %v698_v28 = vadd.f32 %v697_v26, %v453_v22 }
 0x15e   : > { %v837_v29 = vpop.f32.mrb[4].mxu0 }
 0x15f   : > { %v838_v30 = vadd.f32 %v837_v29, %v593_v23  ;;  %v766_v31 = vpop.f32.mrb[0].mxu1  ;;  %v848_v32 = vadd.f32 %v845_v27, %v698_v28  ;;  %v1376_v33 = vpop.f32.mrb[5].mxu0 }
 0x160   : > { %v849_v34 = vadd.f32 %v845_v27, %v766_v31  ;;  %v768_v35 = vpop.f32.mrb[1].mxu1 }
 0x161   : > { %v851_v36 = vadd.f32 %v845_v27, %v838_v30  ;;  %v850_v37 = vadd.f32 %v845_v27, %v768_v35  ;;  %v853_v38 = vmax.f32 %v848_v32, 0.0 }
 0x162   : > { %v854_v39 = vmax.f32 %v849_v34, 0.0 }
 0x163   : > { %v856_v40 = vmax.f32 %v851_v36, 0.0  ;;  %v855_v41 = vmax.f32 %v850_v37, 0.0  ;;  %1045 = vrot.lane.b32.xlu0 %v853_v38, %s1444_s24 }
 0x164   : > { %1047 = vrot.lane.b32.xlu1 %v854_v39, %s1444_s24  ;;  %896 = vmatprep.subr.mxu0 %v854_v39 }
 0x165   : > { %897 = vmatpush1.msra.mxu0 %v853_v38  ;;  %967 = vmatprep.subr.mxu1 %v856_v40 }
 0x166   : > { %968 = vmatpush1.msra.mxu1 %v855_v41  ;;  %1354 = vmatmul.mubr.msk.f32.vlgmr.msra.gmra.mrb[6].mxu0 %vm381_vm0, %v892_v42 }
 0x167   : > { %1049 = vrot.lane.b32.xlu0 %v855_v41, %s1444_s24  ;;  %1355 = vmatmul.mubr.msk.f32.vlgmr.msra.gmra.mrb[4].mxu1 %vm381_vm0, %v892_v42 }
 0x168   : > { %1051 = vrot.lane.b32.xlu1 %v856_v40, %s1444_s24  ;;  %1199 = vmatprep.mubr.f32.mxu1 %v1442_v0 }
 0x169   : > { %1128 = vmatprep.mubr.f32.mxu0 %v1442_v0 }
 0x16b   : > { %1043 = vrot.lane.b32.xlu0 %v1442_v0, %s1444_s24 }
 0x16c   : > { %1209 = vperm.xlu1 %1416, %v1206_v43  }
 0x1d5   : > { %v1046_v44 = vpop.permute.xlu0 %1045 }
 0x1d6   : > { %v1048_v45 = vpop.permute.xlu1 %1047 }
 0x1d7   : > { %v1054_v46 = vsel %vm615_vm2, %v1046_v44, %v1048_v45 }
 0x1d8   : > { %1064 = vmatprep.subr.mxu0 %v1054_v46 }
 0x1d9   : > { %v1050_v47 = vpop.permute.xlu0 %1049 }
 0x1da   : > { %v1052_v48 = vpop.permute.xlu1 %1051  ;;  %v1055_v51 = vsel %vm615_vm2, %v1048_v45, %v1050_v47 }
 0x1db   : > { %v1056_v49 = vsel %vm615_vm2, %v1050_v47, %v1052_v48 }
 0x1dc   : > { %1135 = vmatprep.subr.mxu1 %v1056_v49 }
 0x1dd   : > { %v1044_v52 = vpop.permute.xlu0 %1043  ;;  %1136 = vmatpush1.msra.mxu1 %v1055_v51 }
 0x1de   : > { %v1053_v53 = vsel %vm615_vm2, %v1044_v52, %v1046_v44  ;;  %1357 = vmatmul.mubr.msk.f32.vlgmr.msra.gmra.mrb[4].mxu1 %vm381_vm0, %v891_v50 }
 0x1df   : > { %1065 = vmatpush1.msra.mxu0 %v1053_v53 }
 0x1e0   : > { %1356 = vmatmul.mubr.msk.f32.vlgmr.msra.gmra.mrb[6].mxu0 %vm381_vm0, %v891_v50 }
 0x1eb   : > { %v1210_v54 = vpop.permute.xlu1 %1209 }
 0x2b1   : > { %v1201_v55 = vpop.f32.mrb[4].mxu1 }
 0x2b2   : > { %v1214_v56 = vadd.f32 %v1210_v54, %v1201_v55  ;;  %v1203_v57 = vpop.f32.mrb[5].mxu1 }
 0x2b3   : > { %v1215_v58 = vadd.f32 %v1210_v54, %v1203_v57  ;;  %v1130_v59 = vpop.f32.mrb[6].mxu0 }
 0x2b4   : > { %v1218_v60 = vmax.f32 %v1214_v56, 0.0  ;;  %v1212_v61 = vadd.f32 %v1210_v54, %v1130_v59  ;;  %v1132_v62 = vpop.f32.mrb[7].mxu0 }
 0x2b5   : > { %v1219_v63 = vmax.f32 %v1215_v58, 0.0  ;;  %v1213_v0 = vadd.f32 %v1210_v54, %v1132_v62 }
 0x2b6   : > { %v1222_v1 = vadd.f32 %v1218_v60, %v1519_v4  ;;  %v1216_v5 = vmax.f32 %v1212_v61, 0.0 }
 0x2b7   : > { %v1223_v7 = vadd.f32 %v1219_v63, %v1524_v6  ;;  %v1217_v8 = vmax.f32 %v1213_v0, 0.0 }
 0x2b8   : > { %v1226_v9 = vmax.f32 %v1222_v1, 0.0  ;;  %v1220_v10 = vadd.f32 %v1216_v5, %v1513_v3 }
 0x2b9   : > { %v1227_v11 = vmax.f32 %v1223_v7, 0.0  ;;  %v1221_v12 = vadd.f32 %v1217_v8, %v1511_v2 }
 0x2ba   : > { %1230 = vst [vmem:[%s353_s19 + $0x10] sm:$0xff] %v1226_v9  ;;  %v1224_v13 = vmax.f32 %v1220_v10, 0.0 }
 0x2bb   : > { %1231 = vst [vmem:[%s353_s19 + $0x18] sm:$0xff] %v1227_v11  ;;  %v1225_v14 = vmax.f32 %v1221_v12, 0.0 }
 0x2bc   : > { %1228 = vst [vmem:[%s353_s19] sm:$0xff] %v1224_v13 }
 0x2bd   : > { %1229 = vst [vmem:[%s353_s19 + $0x8] sm:$0xff] %v1225_v14 }
 0x2be PF: > { %s16_s22 = sadd.s32 1, %s1440_s22   ;;  %s1610_s21 = smov %s1436_s0 }
 0x2bf   : > { %p13_p5 = scmp.ge.s32.totalorder %s16_s22, 4   ;;  %s1611_s0 = smov %s1613_s23 }
 0x2c1   :  { %15 = sbr.rel (!%p13_p5) target bundleno = 2 (0x2), region = 77 }

// kernel: temporal_conv_net.3
= control target key start
LH: loop header
LB: loop body
LE: loop exit
PB: predicated region body
PF: predicated region fallthrough
CT: control target
= control target key end

     0   :  { %s1739_s26 = smov 0   ;;  %s1741_s27 = smov 0   ;;  %s1887_s0 = inlined_call_operand.vmem [shape: f32[2,4,512], index: 0, kind: input, shape index: {}, may-alias: {0,1}]   ;;  %s1888_s1 = inlined_call_operand.vmem [shape: f32[2,4,512], index: 1, kind: input, shape index: {}, may-alias: {0,1}]   ;;  %s1889_s2 = inlined_call_operand.vmem [shape: f32[2,8,4], index: 2, kind: input, shape index: {}]   ;;  %s1890_s3 = inlined_call_operand.vmem [shape: f32[8,1], index: 3, kind: input, shape index: {}]   ;;  %s1891_s4 = inlined_call_operand.vmem [shape: f32[2,8,8], index: 4, kind: input, shape index: {}]   ;;  %s1892_s5 = inlined_call_operand.vmem [shape: f32[8,1], index: 5, kind: input, shape index: {}]   ;;  %s1893_s6 = inlined_call_operand.vmem [shape: f32[8,4], index: 6, kind: input, shape index: {}]   ;;  %s1894_s7 = inlined_call_operand.vmem [shape: f32[8,1], index: 7, kind: input, shape index: {}]   ;;  %s1895_s8 = inlined_call_operand.vmem [shape: f32[2,8,512], index: 8, kind: output, shape index: {}]  }
   0x1   :  { %s1743_s28 = smov 0  }
   0x2 LB: > { %s30_s29 = sadd.s32 1, %s1684_s27  ;;  %p1574_p0 = scmp.ge.s32.totalorder %s1688_s28, 1  ;;  %s1688_s28 = sphi %s1743_s28, %s18_s28   ;;  %s1684_s27 = sphi %s1741_s27, %s1897_s27   ;;  %s1680_s26 = sphi %s1739_s26, %s1896_s26  }
   0x3   : > { %p32_p1 = scmp.ge.s32.totalorder %s30_s29, 2  ;;  %p316_p2 = scmp.lt.s32.totalorder %s1688_s28, 3 }
   0x5   : > { %s1899_s29 = smov (%p32_p1, %s30_s29), 0  ;;  %p317_p3 = pnand %p1574_p0, %p316_p2 }
   0x6   : > { %p390_p4 = scmp.lt.s32.totalorder (!%p317_p3), %s1680_s26, 1  ;;  %v1690_v0 = vmov (!%p317_p3), 0.0   ;;  %s1691_s30 = smov (!%p317_p3), 1   ;;  %v1692_v2 = vmov (!%p317_p3), 0   ;;  %v909_v7 = vld [vmem:[%s1890_s3] sm:$0xff] (!%p317_p3)  ;;  %vm437_vm0 = vcmask (!%p317_p3), 1043456  }
   0x7   : > { %320 = sbr.rel (%p317_p3) target bundleno = 705 (0x2c1), region = 52  ;;  %417 = vst [vmem:[#allocation2] sm:$0xff] (!%p317_p3), %v1690_v0  ;;  %666 = vrot.lane.b32.xlu1 (!%p317_p3), %v1690_v0, %s1691_s30  ;;  %v663_v1 = vcombine.high (!%p317_p3), %v1690_v0, %v1690_v0  ;;  %583 = vmatprep.mubr.f32.mxu1 (!%p317_p3), %v1690_v0  ;;  %v421_v12 = vld [vmem:[%s1889_s2 + $0x8] sm:$0xff] (!%p317_p3)  ;;  %vm433_vm1 = vcmask (!%p317_p3), 31744   ;;  %vm1693_vm2 = vmmov (!%p317_p3), 0   ;;  %vm678_vm3 = vcmask (!%p317_p3), 7168  }
   0x8   : > { %512 = vmatprep.mubr.f32.mxu0 (!%p317_p3), %v1690_v0  ;;  %1661 = vset.pattern.permute.xlu1 (!%p317_p3), %v1692_v2  ;;  %v420_v18 = vld [vmem:[%s1889_s2] sm:$0xff] (!%p317_p3)  ;;  %v960_v46 = vld [vmem:[%s1891_s4 + $0x8] sm:$0xff] (!%p317_p3)  ;;  %vm961_vm4 = vcmask (!%p317_p3), 64512  }
   0x9   : > { %668 = vrot.lane.b32.xlu0 (!%p317_p3), %v663_v1, %s1691_s30  ;;  %v1290_v48 = vld [vmem:[%s1894_s7] sm:$0xff] (!%p317_p3) }
   0xa   : > { %1660 = vset.pattern.permute.xlu0 (!%p317_p3), %v1692_v2  ;;  %v1275_v49 = vld [vmem:[%s1892_s5] sm:$0xff] (!%p317_p3) }
   0xb   : > { %v959_v55 = vld [vmem:[%s1891_s4] sm:$0xff] (!%p317_p3) }
   0xc   : > { %v1289_v60 = vld [vmem:[%s1893_s6] sm:$0xff] (!%p317_p3) }
   0xe   : > { %s1901_s26 = smov (!%p390_p4, %s1680_s26), 1 }
   0xf   : > { %s1610_s9 = sshll.u32 %s1901_s26, 4  ;;  %s1611_s10 = sshll.u32 %s1901_s26, 5 }
  0x10   : > { %s397_s12 = scalar_lea.vmem %s1888_s1, %s1610_s9  ;;  %s407_s13 = scalar_lea.vmem %s1895_s8, %s1611_s10 }
  0x11   : > { %v1771_v3 = vld [vmem:[%s397_s12] sm:$0xff]  ;;  %v1773_v4 = vld [vmem:[%s397_s12 + $0x8] sm:$0xff] }
  0x12   : > { %418 = vst [vmem:[#allocation2 + $0x8] sm:$0xff] %v1771_v3  ;;  %670 = vrot.lane.b32.xlu0 %v1771_v3, %s1691_s30  ;;  %v1780_v5 = vcombine.high %v1771_v3, %v1771_v3  ;;  %419 = vst [vmem:[#allocation2 + $0x10] sm:$0xff] %v1773_v4  ;;  %v1787_v6 = vcombine.high %v1773_v4, %v1773_v4 }
  0x14   : > { %672 = vrot.lane.b32.xlu1 %v1780_v5, %s1691_s30 }
  0x16   : > { %674 = vrot.lane.b32.xlu0 %v1773_v4, %s1691_s30 }
  0x18   : > { %676 = vrot.lane.b32.xlu1 %v1787_v6, %s1691_s30 }
  0x19   : > { %v426_v8 = vld [vmem:[#allocation2 + $0xc] sm:$0xff]  ;;  %v425_v9 = vld [vmem:[#allocation2 + $0x4] sm:$0xff]  ;;  %v427_v13 = vld [vmem:[#allocation2 + $0x14] sm:$0xf] }
  0x1a   : > { %v432_v10 = vcombine.high %v426_v8, %v426_v8  ;;  %v431_v11 = vcombine.high %v425_v9, %v425_v9  ;;  %912 = vperm.xlu0 %1660, %v909_v7  }
  0x1c   : > { %1584 = vmatprep.subr.msk.mxu1 %vm437_vm0, %v432_v10  ;;  %1581 = vmatprep.subr.msk.mxu0 %vm437_vm0, %v431_v11 }
  0x1d   : > { %1585 = vmatpush1.msk.msra.mxu1 %vm437_vm0, %v426_v8  ;;  %1582 = vmatpush1.msk.msra.mxu0 %vm437_vm0, %v425_v9 }
  0x1e   : > { %1586 = vmatmul.mubr.msk.f32.vlgmr.msra.gmra.mrb[0].mxu1 %vm433_vm1, %v421_v12  ;;  %1583 = vmatmul.mubr.msk.f32.vlgmr.msra.gmra.mrb[0].mxu0 %vm433_vm1, %v421_v12 }
  0x1f   : > { %1616 = vmatprep.subr.mxu0 %v1690_v0  ;;  %761 = vmatprep.mubr.f32.mxu1 %v1690_v0 }
  0x20   : > { %1617 = vmatpush3.msk.msra.mxu0 %vm437_vm0, %v427_v13  ;;  %1618 = vmatprep.mubr.msk.f32.mxu0 %vm1693_vm2, %v1690_v0 }
  0x21   : > { %1621 = vmatprep.subr.mxu0 %v1690_v0 }
  0x22   : > { %1619 = vmatmul.mubr.msk.f32.vlgmr.msra.gmra.mrb[2].mxu0 %vm433_vm1, %v421_v12 }
  0x23   : > { %1623 = vmatprep.mubr.msk.f32.mxu0 %vm1693_vm2, %v1690_v0 }
  0x79   : > { %v667_v15 = vpop.permute.xlu1 %666 }
  0x7b   : > { %v669_v14 = vpop.permute.xlu0 %668 }
  0x7c   : > { %v679_v19 = vsel %vm678_vm3, %v667_v15, %v669_v14 }
  0x84   : > { %v671_v16 = vpop.permute.xlu0 %670 }
  0x85   : > { %v680_v17 = vsel %vm678_vm3, %v669_v14, %v671_v16 }
  0x86   : > { %1589 = vmatprep.subr.msk.mxu1 %vm437_vm0, %v680_v17  ;;  %v673_v20 = vpop.permute.xlu1 %672 }
  0x87   : > { %1590 = vmatpush1.msk.msra.mxu1 %vm437_vm0, %v679_v19  ;;  %v681_v23 = vsel %vm678_vm3, %v671_v16, %v673_v20 }
  0x88   : > { %1591 = vmatmul.mubr.msk.f32.vlgmr.msra.gmra.mrb[2].mxu1 %vm433_vm1, %v420_v18  ;;  %v675_v21 = vpop.permute.xlu0 %674 }
  0x89   : > { %v682_v22 = vsel %vm678_vm3, %v673_v20, %v675_v21  ;;  %832 = vmatprep.mubr.f32.mxu1 %v1690_v0 }
  0x8a   : > { %1592 = vmatprep.subr.msk.mxu1 %vm437_vm0, %v682_v22  ;;  %v677_v24 = vpop.permute.xlu1 %676 }
  0x8b   : > { %v683_v25 = vsel %vm678_vm3, %v675_v21, %v677_v24  ;;  %1593 = vmatpush1.msk.msra.mxu1 %vm437_vm0, %v681_v23 }
  0x8c   : > { %1594 = vmatmul.mubr.msk.f32.vlgmr.msra.gmra.mrb[0].mxu1 %vm433_vm1, %v420_v18  ;;  %1622 = vmatpush3.msk.msra.mxu0 %vm437_vm0, %v683_v25 }
  0x8d   : > { %1624 = vmatmul.mubr.msk.f32.vlgmr.msra.gmra.mrb[4].mxu0 %vm433_vm1, %v420_v18  ;;  %1100 = vmatprep.mubr.f32.mxu1 %v1690_v0 }
  0x8e   : > { %1029 = vmatprep.mubr.f32.mxu0 %v1690_v0 }
  0x99   : > { %v913_v32 = vpop.permute.xlu0 %912 }
  0xf1   : > { %v514_v26 = vpop.f32.mrb[0].mxu0 }
  0xf2   : > { %v516_v27 = vpop.f32.mrb[1].mxu0 }
  0xf5   : > { %v656_v28 = vpop.f32.mrb[2].mxu0 }
  0xf6   : > { %v1620_v29 = vpop.f32.mrb[3].mxu0 }
 0x15b   : > { %v763_v30 = vpop.f32.mrb[2].mxu1 }
 0x15c   : > { %v765_v31 = vpop.f32.mrb[3].mxu1 }
 0x15d   : > { %v766_v33 = vadd.f32 %v765_v31, %v516_v27 }
 0x15f   : > { %v834_v34 = vpop.f32.mrb[0].mxu1  ;;  %v916_v35 = vadd.f32 %v913_v32, %v766_v33 }
 0x160   : > { %v917_v36 = vadd.f32 %v913_v32, %v834_v34  ;;  %v836_v37 = vpop.f32.mrb[1].mxu1  ;;  %v905_v38 = vpop.f32.mrb[4].mxu0 }
 0x161   : > { %v918_v39 = vadd.f32 %v913_v32, %v836_v37  ;;  %v906_v40 = vadd.f32 %v905_v38, %v656_v28  ;;  %v921_v41 = vmax.f32 %v916_v35, 0.0  ;;  %v1625_v42 = vpop.f32.mrb[5].mxu0 }
 0x162   : > { %v922_v43 = vmax.f32 %v917_v36, 0.0 }
 0x163   : > { %v923_v44 = vmax.f32 %v918_v39, 0.0  ;;  %v919_v45 = vadd.f32 %v913_v32, %v906_v40  ;;  %1114 = vrot.lane.b32.xlu1 %v921_v41, %s1691_s30 }
 0x164   : > { %965 = vmatprep.subr.mxu0 %v922_v43 }
 0x165   : > { %v924_v47 = vmax.f32 %v919_v45, 0.0  ;;  %1118 = vrot.lane.b32.xlu0 %v923_v44, %s1691_s30  ;;  %966 = vmatpush1.msra.mxu0 %v921_v41 }
 0x166   : > { %1597 = vmatmul.mubr.msk.f32.vlgmr.msra.gmra.mrb[6].mxu0 %vm961_vm4, %v960_v46 }
 0x167   : > { %1116 = vrot.lane.b32.xlu1 %v922_v43, %s1691_s30  ;;  %1036 = vmatprep.subr.mxu1 %v924_v47 }
 0x168   : > { %1037 = vmatpush1.msra.mxu1 %v923_v44  ;;  %1197 = vmatprep.mubr.f32.mxu0 %v1690_v0 }
 0x169   : > { %1112 = vrot.lane.b32.xlu0 %v1690_v0, %s1691_s30  ;;  %1598 = vmatmul.mubr.msk.f32.vlgmr.msra.gmra.mrb[4].mxu1 %vm961_vm4, %v960_v46 }
 0x16a   : > { %1268 = vmatprep.mubr.f32.mxu1 %v1690_v0 }
 0x16b   : > { %1120 = vrot.lane.b32.xlu1 %v924_v47, %s1691_s30 }
 0x16d   : > { %1293 = vperm.xlu0 %1660, %v1290_v48  }
 0x16f   : > { %1278 = vperm.xlu1 %1661, %v1275_v49  }
 0x1d5   : > { %v1115_v50 = vpop.permute.xlu1 %1114 }
 0x1d7   : > { %v1119_v51 = vpop.permute.xlu0 %1118 }
 0x1d9   : > { %v1117_v52 = vpop.permute.xlu1 %1116 }
 0x1da   : > { %v1123_v53 = vsel %vm678_vm3, %v1115_v50, %v1117_v52  ;;  %v1124_v59 = vsel %vm678_vm3, %v1117_v52, %v1119_v51 }
 0x1db   : > { %v1113_v54 = vpop.permute.xlu0 %1112  ;;  %1133 = vmatprep.subr.mxu0 %v1123_v53 }
 0x1dc   : > { %v1122_v56 = vsel %vm678_vm3, %v1113_v54, %v1115_v50 }
 0x1dd   : > { %1134 = vmatpush1.msra.mxu0 %v1122_v56  ;;  %v1121_v57 = vpop.permute.xlu1 %1120 }
 0x1de   : > { %1599 = vmatmul.mubr.msk.f32.vlgmr.msra.gmra.mrb[6].mxu0 %vm961_vm4, %v959_v55  ;;  %v1125_v58 = vsel %vm678_vm3, %v1119_v51, %v1121_v57  ;;  %1601 = vmatprep.subr.msk.mxu0 %vm437_vm0, %v1780_v5 }
 0x1df   : > { %1204 = vmatprep.subr.mxu1 %v1125_v58  ;;  %1602 = vmatpush1.msk.msra.mxu0 %vm437_vm0, %v1771_v3 }
 0x1e0   : > { %1205 = vmatpush1.msra.mxu1 %v1124_v59  ;;  %1375 = vmatprep.mubr.f32.mxu0 %v1690_v0 }
 0x1e1   : > { %1600 = vmatmul.mubr.msk.f32.vlgmr.msra.gmra.mrb[4].mxu1 %vm961_vm4, %v959_v55  ;;  %1604 = vmatprep.subr.msk.mxu1 %vm437_vm0, %v1787_v6 }
 0x1e2   : > { %1603 = vmatmul.mubr.msk.f32.vlgmr.msra.gmra.mrb[8].mxu0 %vm433_vm1, %v1289_v60  ;;  %1605 = vmatpush1.msk.msra.mxu1 %vm437_vm0, %v1773_v4 }
 0x1e3   : > { %1446 = vmatprep.mubr.f32.mxu1 %v1690_v0 }
 0x1e5   : > { %1606 = vmatmul.mubr.msk.f32.vlgmr.msra.gmra.mrb[6].mxu1 %vm433_vm1, %v1289_v60 }
 0x1ec   : > { %v1294_v3 = vpop.permute.xlu0 %1293 }
 0x1ee   : > { %v1279_v61 = vpop.permute.xlu1 %1278 }
 0x2b1   : > { %v1199_v62 = vpop.f32.mrb[6].mxu0 }
 0x2b2   : > { %v1201_v63 = vpop.f32.mrb[7].mxu0  ;;  %v1281_v1 = vadd.f32 %v1279_v61, %v1199_v62 }
 0x2b3   : > { %v1282_v2 = vadd.f32 %v1279_v61, %v1201_v63 }
 0x2b4   : > { %v1270_v5 = vpop.f32.mrb[4].mxu1  ;;  %v1285_v9 = vmax.f32 %v1281_v1, 0.0 }
 0x2b5   : > { %v1283_v7 = vadd.f32 %v1279_v61, %v1270_v5  ;;  %v1272_v8 = vpop.f32.mrb[5].mxu1  ;;  %v1377_v6 = vpop.f32.mrb[8].mxu0  ;;  %v1286_v4 = vmax.f32 %v1282_v2, 0.0 }
 0x2b6   : > { %v1284_v10 = vadd.f32 %v1279_v61, %v1272_v8  ;;  %v1378_v11 = vadd.f32 %v1377_v6, %v1294_v3  ;;  %v1379_v12 = vpop.f32.mrb[9].mxu0 }
 0x2b7   : > { %v1380_v13 = vadd.f32 %v1379_v12, %v1294_v3  ;;  %v1287_v15 = vmax.f32 %v1283_v7, 0.0 }
 0x2b8   : > { %v1453_v0 = vadd.f32 %v1378_v11, %v1285_v9  ;;  %v1448_v14 = vpop.f32.mrb[6].mxu1  ;;  %v1288_v19 = vmax.f32 %v1284_v10, 0.0 }
 0x2b9   : > { %v1454_v16 = vadd.f32 %v1380_v13, %v1286_v4  ;;  %v1449_v17 = vadd.f32 %v1448_v14, %v1294_v3  ;;  %v1450_v18 = vpop.f32.mrb[7].mxu1 }
 0x2ba   : > { %v1457_v20 = vmax.f32 %v1453_v0, 0.0  ;;  %v1451_v21 = vadd.f32 %v1450_v18, %v1294_v3 }
 0x2bb   : > { %v1458_v22 = vmax.f32 %v1454_v16, 0.0  ;;  %v1455_v23 = vadd.f32 %v1449_v17, %v1287_v15 }
 0x2bc   : > { %1461 = vst [vmem:[%s407_s13] sm:$0xff] %v1457_v20  ;;  %v1456_v24 = vadd.f32 %v1451_v21, %v1288_v19 }
 0x2bd   : > { %1462 = vst [vmem:[%s407_s13 + $0x8] sm:$0xff] %v1458_v22  ;;  %v1459_v25 = vmax.f32 %v1455_v23, 0.0 }
 0x2be   : > { %v1460_v26 = vmax.f32 %v1456_v24, 0.0 }
 0x2bf   : > { %1463 = vst [vmem:[%s407_s13 + $0x10] sm:$0xff] %v1459_v25 }
 0x2c0   : > { %1464 = vst [vmem:[%s407_s13 + $0x18] sm:$0xff] %v1460_v26 }
 0x2c1 PF: > { %s18_s28 = sadd.s32 1, %s1688_s28   ;;  %s1896_s26 = smov %s1684_s27 }
 0x2c2   : > { %p15_p5 = scmp.ge.s32.totalorder %s18_s28, 4   ;;  %s1897_s27 = smov %s1899_s29 }
 0x2c4   :  { %17 = sbr.rel (!%p15_p5) target bundleno = 2 (0x2), region = 85 }

// kernel: temporal_conv_net.5
= control target key start
LH: loop header
LB: loop body
LE: loop exit
PB: predicated region body
PF: predicated region fallthrough
CT: control target
= control target key end

     0   :  { %s1726_s26 = smov 0   ;;  %s1728_s27 = smov 0   ;;  %s1863_s0 = inlined_call_operand.vmem [shape: f32[2,8,512], index: 0, kind: input, shape index: {}, may-alias: {0,1}]   ;;  %s1864_s1 = inlined_call_operand.vmem [shape: f32[2,8,512], index: 1, kind: input, shape index: {}, may-alias: {0,1}]   ;;  %s1865_s2 = inlined_call_operand.vmem [shape: f32[2,4,8], index: 2, kind: input, shape index: {}]   ;;  %s1866_s3 = inlined_call_operand.vmem [shape: f32[4,1], index: 3, kind: input, shape index: {}]   ;;  %s1867_s4 = inlined_call_operand.vmem [shape: f32[2,4,4], index: 4, kind: input, shape index: {}]   ;;  %s1868_s5 = inlined_call_operand.vmem [shape: f32[4,1], index: 5, kind: input, shape index: {}]   ;;  %s1869_s6 = inlined_call_operand.vmem [shape: f32[4,8], index: 6, kind: input, shape index: {}]   ;;  %s1870_s7 = inlined_call_operand.vmem [shape: f32[4,1], index: 7, kind: input, shape index: {}]   ;;  %s1871_s8 = inlined_call_operand.vmem [shape: f32[2,4,512], index: 8, kind: output, shape index: {}]  }
   0x1   :  { %s1730_s28 = smov 0  }
   0x2 LB: > { %s30_s29 = sadd.s32 1, %s1671_s27  ;;  %p1566_p0 = scmp.ge.s32.totalorder %s1675_s28, 1  ;;  %s1675_s28 = sphi %s1730_s28, %s18_s28   ;;  %s1671_s27 = sphi %s1728_s27, %s1873_s27   ;;  %s1667_s26 = sphi %s1726_s26, %s1872_s26  }
   0x3   : > { %p32_p1 = scmp.ge.s32.totalorder %s30_s29, 2  ;;  %p316_p2 = scmp.lt.s32.totalorder %s1675_s28, 3 }
   0x5   : > { %s1875_s29 = smov (%p32_p1, %s30_s29), 0  ;;  %p317_p3 = pnand %p1566_p0, %p316_p2 }
   0x6   : > { %p390_p4 = scmp.lt.s32.totalorder (!%p317_p3), %s1667_s26, 1  ;;  %v1677_v0 = vmov (!%p317_p3), 0.0   ;;  %v1678_v1 = vmov (!%p317_p3), 0   ;;  %s1679_s30 = smov (!%p317_p3), 4   ;;  %v428_v5 = vld [vmem:[%s1865_s2 + $0x4] sm:$0xf] (!%p317_p3) }
   0x7   : > { %320 = sbr.rel (%p317_p3) target bundleno = 706 (0x2c2), region = 52  ;;  %503 = vmatprep.mubr.f32.mxu0 (!%p317_p3), %v1677_v0  ;;  %574 = vmatprep.mubr.f32.mxu1 (!%p317_p3), %v1677_v0  ;;  %vm435_vm0 = vcmask (!%p317_p3), 64512   ;;  %vm1680_vm1 = vmmov (!%p317_p3), 0   ;;  %v895_v7 = vld [vmem:[%s1866_s3] sm:$0xf] (!%p317_p3)  ;;  %vm669_vm2 = vcmask (!%p317_p3), 31744  }
   0x8   : > { %1651 = vset.pattern.permute.xlu1 (!%p317_p3), %v1678_v1  ;;  %1652 = vset.pattern.permute.xlu0 (!%p317_p3), %v1678_v1  ;;  %v427_v14 = vld [vmem:[%s1865_s2] sm:$0xf] (!%p317_p3)  ;;  %vm950_vm3 = vcmask (!%p317_p3), 1043456   ;;  %v946_v42 = vld [vmem:[%s1867_s4 + $0x4] sm:$0xf] (!%p317_p3) }
   0x9   : > { %1647 = vrot.lane.b32.xlu0 (!%p317_p3), %v1677_v0, %s1679_s30  ;;  %v1273_v43 = vld [vmem:[%s1868_s5] sm:$0xf] (!%p317_p3) }
   0xa   : > { %v1288_v44 = vld [vmem:[%s1870_s7] sm:$0xf] (!%p317_p3) }
   0xb   : > { %v945_v51 = vld [vmem:[%s1867_s4] sm:$0xf] (!%p317_p3) }
   0xc   : > { %v1287_v55 = vld [vmem:[%s1869_s6] sm:$0xf] (!%p317_p3) }
   0xe   : > { %s1877_s26 = smov (!%p390_p4, %s1667_s26), 1 }
   0xf   : > { %s1596_s9 = sshll.u32 %s1877_s26, 5  ;;  %s1597_s10 = sshll.u32 %s1877_s26, 4 }
  0x10   : > { %s397_s12 = scalar_lea.vmem %s1864_s1, %s1596_s9  ;;  %s407_s13 = scalar_lea.vmem %s1871_s8, %s1597_s10 }
  0x11   : > { %v1754_v2 = vld [vmem:[%s397_s12 + $0x8] sm:$0xff]  ;;  %v1756_v3 = vld [vmem:[%s397_s12] sm:$0xff]  ;;  %v1762_v4 = vld [vmem:[%s397_s12 + $0x10] sm:$0xff] }
  0x12   : > { %663 = vrot.lane.b32.xlu1 %v1754_v2, %s1679_s30  ;;  %661 = vrot.lane.b32.xlu0 %v1756_v3, %s1679_s30  ;;  %v1767_v6 = vld [vmem:[%s397_s12 + $0x18] sm:$0xff] }
  0x13   : > { %439 = vmatprep.subr.mxu0 %v1756_v3  ;;  %510 = vmatprep.subr.mxu1 %v1762_v4 }
  0x14   : > { %440 = vmatpush1.msra.mxu0 %v1677_v0  ;;  %511 = vmatpush1.msra.mxu1 %v1754_v2 }
  0x15   : > { %1573 = vmatmul.mubr.msk.f32.vlgmr.msra.gmra.mrb[0].mxu0 %vm435_vm0, %v428_v5  ;;  %1574 = vmatmul.mubr.msk.f32.vlgmr.msra.gmra.mrb[0].mxu1 %vm435_vm0, %v428_v5 }
  0x16   : > { %665 = vrot.lane.b32.xlu1 %v1762_v4, %s1679_s30  ;;  %667 = vrot.lane.b32.xlu0 %v1767_v6, %s1679_s30 }
  0x17   : > { %1602 = vmatprep.subr.mxu0 %v1677_v0  ;;  %1604 = vmatprep.mubr.msk.f32.mxu0 %vm1680_vm1, %v1677_v0 }
  0x18   : > { %1603 = vmatpush3.msra.mxu0 %v1767_v6  ;;  %747 = vmatprep.mubr.f32.mxu1 %v1677_v0 }
  0x19   : > { %1605 = vmatmul.mubr.msk.f32.vlgmr.msra.gmra.mrb[2].mxu0 %vm435_vm0, %v428_v5  ;;  %1607 = vmatprep.subr.mxu0 %v1677_v0 }
  0x1a   : > { %1609 = vmatprep.mubr.msk.f32.mxu0 %vm1680_vm1, %v1677_v0  ;;  %898 = vperm.xlu1 %1651, %v895_v7  }
  0x7b   : > { %v1648_v8 = vpop.permute.xlu0 %1647 }
  0x7c   : > { %v1650_v9 = vunpack.i.h.bf16 %v1648_v8  ;;  %v1649_v10 = vunpack.i.l.bf16 %v1648_v8 }
  0x7e   : > { %v670_v15 = vsel %vm669_vm2, %v1650_v9, %v1649_v10 }
  0x84   : > { %v664_v11 = vpop.permute.xlu1 %663  ;;  %v662_v12 = vpop.permute.xlu0 %661 }
  0x85   : > { %v671_v13 = vsel %vm669_vm2, %v1649_v10, %v662_v12  ;;  %v672_v20 = vsel %vm669_vm2, %v662_v12, %v664_v11 }
  0x86   : > { %683 = vmatprep.subr.mxu1 %v671_v13 }
  0x87   : > { %684 = vmatpush1.msra.mxu1 %v670_v15 }
  0x88   : > { %v666_v16 = vpop.permute.xlu1 %665  ;;  %1576 = vmatmul.mubr.msk.f32.vlgmr.msra.gmra.mrb[2].mxu1 %vm435_vm0, %v427_v14  ;;  %v668_v17 = vpop.permute.xlu0 %667 }
  0x89   : > { %v674_v18 = vsel %vm669_vm2, %v666_v16, %v668_v17  ;;  %v673_v19 = vsel %vm669_vm2, %v664_v11, %v666_v16  ;;  %818 = vmatprep.mubr.f32.mxu1 %v1677_v0 }
  0x8a   : > { %754 = vmatprep.subr.mxu1 %v673_v19  ;;  %1608 = vmatpush3.msra.mxu0 %v674_v18 }
  0x8b   : > { %755 = vmatpush1.msra.mxu1 %v672_v20  ;;  %1610 = vmatmul.mubr.msk.f32.vlgmr.msra.gmra.mrb[4].mxu0 %vm435_vm0, %v427_v14 }
  0x8c   : > { %1577 = vmatmul.mubr.msk.f32.vlgmr.msra.gmra.mrb[0].mxu1 %vm435_vm0, %v427_v14  ;;  %1027 = vmatprep.mubr.f32.mxu0 %v1677_v0 }
  0x8d   : > { %1098 = vmatprep.mubr.f32.mxu1 %v1677_v0 }
  0x99   : > { %v899_v27 = vpop.permute.xlu1 %898 }
  0xe8   : > { %v505_v21 = vpop.f32.mrb[0].mxu0 }
  0xe9   : > { %v507_v22 = vpop.f32.mrb[1].mxu0 }
  0xec   : > { %v647_v23 = vpop.f32.mrb[2].mxu0 }
  0xed   : > { %v1606_v24 = vpop.f32.mrb[3].mxu0 }
 0x15b   : > { %v749_v25 = vpop.f32.mrb[2].mxu1 }
 0x15c   : > { %v751_v26 = vpop.f32.mrb[3].mxu1 }
 0x15d   : > { %v752_v28 = vadd.f32 %v751_v26, %v507_v22 }
 0x15e   : > { %v891_v29 = vpop.f32.mrb[4].mxu0 }
 0x15f   : > { %v892_v30 = vadd.f32 %v891_v29, %v647_v23  ;;  %v820_v31 = vpop.f32.mrb[0].mxu1  ;;  %v902_v32 = vadd.f32 %v899_v27, %v752_v28  ;;  %v1611_v33 = vpop.f32.mrb[5].mxu0 }
 0x160   : > { %v903_v34 = vadd.f32 %v899_v27, %v820_v31  ;;  %v822_v35 = vpop.f32.mrb[1].mxu1 }
 0x161   : > { %v905_v36 = vadd.f32 %v899_v27, %v892_v30  ;;  %v904_v37 = vadd.f32 %v899_v27, %v822_v35  ;;  %v907_v38 = vmax.f32 %v902_v32, 0.0 }
 0x162   : > { %v908_v39 = vmax.f32 %v903_v34, 0.0 }
 0x163   : > { %v910_v40 = vmax.f32 %v905_v36, 0.0  ;;  %v909_v41 = vmax.f32 %v904_v37, 0.0  ;;  %1108 = vrot.lane.b32.xlu0 %v907_v38, %s1679_s30 }
 0x164   : > { %1110 = vrot.lane.b32.xlu1 %v908_v39, %s1679_s30  ;;  %1579 = vmatprep.subr.msk.mxu0 %vm950_vm3, %v908_v39 }
 0x165   : > { %1580 = vmatpush1.msk.msra.mxu0 %vm950_vm3, %v907_v38  ;;  %1582 = vmatprep.subr.msk.mxu1 %vm950_vm3, %v910_v40 }
 0x166   : > { %1583 = vmatpush1.msk.msra.mxu1 %vm950_vm3, %v909_v41  ;;  %1581 = vmatmul.mubr.msk.f32.vlgmr.msra.gmra.mrb[6].mxu0 %vm669_vm2, %v946_v42 }
 0x167   : > { %1112 = vrot.lane.b32.xlu0 %v909_v41, %s1679_s30  ;;  %1584 = vmatmul.mubr.msk.f32.vlgmr.msra.gmra.mrb[4].mxu1 %vm669_vm2, %v946_v42 }
 0x168   : > { %1114 = vrot.lane.b32.xlu1 %v910_v40, %s1679_s30  ;;  %1266 = vmatprep.mubr.f32.mxu1 %v1677_v0 }
 0x169   : > { %1195 = vmatprep.mubr.f32.mxu0 %v1677_v0 }
 0x16b   : > { %1106 = vrot.lane.b32.xlu0 %v1677_v0, %s1679_s30 }
 0x16c   : > { %1276 = vperm.xlu1 %1651, %v1273_v43  }
 0x16f   : > { %1291 = vperm.xlu0 %1652, %v1288_v44  }
 0x1d5   : > { %v1109_v45 = vpop.permute.xlu0 %1108 }
 0x1d6   : > { %v1111_v46 = vpop.permute.xlu1 %1110 }
 0x1d7   : > { %v1117_v47 = vsel %vm669_vm2, %v1109_v45, %v1111_v46 }
 0x1d8   : > { %1585 = vmatprep.subr.msk.mxu0 %vm950_vm3, %v1117_v47 }
 0x1d9   : > { %v1113_v48 = vpop.permute.xlu0 %1112 }
 0x1da   : > { %v1115_v49 = vpop.permute.xlu1 %1114  ;;  %v1118_v52 = vsel %vm669_vm2, %v1111_v46, %v1113_v48 }
 0x1db   : > { %v1119_v50 = vsel %vm669_vm2, %v1113_v48, %v1115_v49 }
 0x1dc   : > { %1588 = vmatprep.subr.msk.mxu1 %vm950_vm3, %v1119_v50 }
 0x1dd   : > { %v1107_v53 = vpop.permute.xlu0 %1106  ;;  %1589 = vmatpush1.msk.msra.mxu1 %vm950_vm3, %v1118_v52 }
 0x1de   : > { %v1116_v54 = vsel %vm669_vm2, %v1107_v53, %v1109_v45  ;;  %1590 = vmatmul.mubr.msk.f32.vlgmr.msra.gmra.mrb[4].mxu1 %vm669_vm2, %v945_v51  ;;  %1368 = vmatprep.subr.mxu1 %v1767_v6 }
 0x1df   : > { %1586 = vmatpush1.msk.msra.mxu0 %vm950_vm3, %v1116_v54  ;;  %1369 = vmatpush1.msra.mxu1 %v1762_v4 }
 0x1e0   : > { %1587 = vmatmul.mubr.msk.f32.vlgmr.msra.gmra.mrb[6].mxu0 %vm669_vm2, %v945_v51  ;;  %1432 = vmatprep.mubr.f32.mxu1 %v1677_v0 }
 0x1e1   : > { %1297 = vmatprep.subr.mxu0 %v1754_v2  ;;  %1361 = vmatprep.mubr.f32.mxu0 %v1677_v0 }
 0x1e2   : > { %1592 = vmatmul.mubr.msk.f32.vlgmr.msra.gmra.mrb[6].mxu1 %vm435_vm0, %v1287_v55  ;;  %1298 = vmatpush1.msra.mxu0 %v1756_v3 }
 0x1e4   : > { %1591 = vmatmul.mubr.msk.f32.vlgmr.msra.gmra.mrb[8].mxu0 %vm435_vm0, %v1287_v55 }
 0x1eb   : > { %v1277_v56 = vpop.permute.xlu1 %1276 }
 0x1ee   : > { %v1292_v62 = vpop.permute.xlu0 %1291 }
 0x2b1   : > { %v1268_v57 = vpop.f32.mrb[4].mxu1 }
 0x2b2   : > { %v1281_v58 = vadd.f32 %v1277_v56, %v1268_v57  ;;  %v1270_v59 = vpop.f32.mrb[5].mxu1 }
 0x2b3   : > { %v1282_v60 = vadd.f32 %v1277_v56, %v1270_v59  ;;  %v1197_v61 = vpop.f32.mrb[6].mxu0 }
 0x2b4   : > { %v1279_v63 = vadd.f32 %v1277_v56, %v1197_v61  ;;  %v1199_v1 = vpop.f32.mrb[7].mxu0  ;;  %v1285_v5 = vmax.f32 %v1281_v58, 0.0 }
 0x2b5   : > { %v1280_v4 = vadd.f32 %v1277_v56, %v1199_v1  ;;  %v1434_v2 = vpop.f32.mrb[6].mxu1  ;;  %v1286_v7 = vmax.f32 %v1282_v60, 0.0 }
 0x2b6   : > { %v1435_v0 = vadd.f32 %v1434_v2, %v1292_v62  ;;  %v1436_v6 = vpop.f32.mrb[7].mxu1  ;;  %v1283_v9 = vmax.f32 %v1279_v63, 0.0 }
 0x2b7   : > { %v1437_v8 = vadd.f32 %v1436_v6, %v1292_v62  ;;  %v1363_v3 = vpop.f32.mrb[8].mxu0  ;;  %v1284_v13 = vmax.f32 %v1280_v4, 0.0 }
 0x2b8   : > { %v1441_v10 = vadd.f32 %v1435_v0, %v1285_v5  ;;  %v1364_v11 = vadd.f32 %v1363_v3, %v1292_v62  ;;  %v1365_v12 = vpop.f32.mrb[9].mxu0 }
 0x2b9   : > { %v1442_v14 = vadd.f32 %v1437_v8, %v1286_v7  ;;  %v1366_v15 = vadd.f32 %v1365_v12, %v1292_v62 }
 0x2ba   : > { %v1445_v16 = vmax.f32 %v1441_v10, 0.0  ;;  %v1439_v17 = vadd.f32 %v1364_v11, %v1283_v9 }
 0x2bb   : > { %v1446_v18 = vmax.f32 %v1442_v14, 0.0  ;;  %v1440_v19 = vadd.f32 %v1366_v15, %v1284_v13 }
 0x2bc   : > { %v1443_v20 = vmax.f32 %v1439_v17, 0.0 }
 0x2bd   : > { %v1452_v21 = vcombine.low %v1445_v16, %v1446_v18  ;;  %v1444_v22 = vmax.f32 %v1440_v19, 0.0 }
 0x2bf   : > { %1456 = vst [vmem:[%s407_s13 + $0x8] sm:$0xff] %v1452_v21  ;;  %v1451_v23 = vcombine.low %v1443_v20, %v1444_v22 }
 0x2c1   : > { %1455 = vst [vmem:[%s407_s13] sm:$0xff] %v1451_v23 }
 0x2c2 PF: > { %s18_s28 = sadd.s32 1, %s1675_s28   ;;  %s1872_s26 = smov %s1671_s27 }
 0x2c3   : > { %p15_p5 = scmp.ge.s32.totalorder %s18_s28, 4   ;;  %s1873_s27 = smov %s1875_s29 }
 0x2c5   :  { %17 = sbr.rel (!%p15_p5) target bundleno = 2 (0x2), region = 85 }

</bundles_post_ra>
